<compile_context>
chip_gen: v7x
topology: tpu7x:2x2x1
jax: 0.10.0
libtpu: 0.0.40
codegen_flags: <defaults>
</compile_context>

<pallas_src>
import functools

import jax
import jax.numpy as jnp
import numpy as np
from jax import lax
from jax.experimental import pallas as pl
from jax.experimental.pallas import tpu as pltpu


def _fused_cnn_kernel(x_ref, mask_ref, w1_ref, b1_ref, w2_ref, b2_ref,
                      w3_ref, b3_ref, o_ref, *, n, h, w):
    """Fused 3-layer CNN.

    x_ref   : (8, L + 6*S)   padded-layout input slab (margin 3*S of zeros each side)
    mask_ref: (1, L + 4*S)   1.0 at per-image interior pixels, 0.0 at borders/margins
    wK_ref  : (CoutK, 9*CinK) packed im2col weights;  bK_ref: (CoutK, 1)
    o_ref   : (8, L)         row 0 = sigmoid(conv3) in padded layout
    where Hp = h+2, Wp = w+2, L = n*Hp*Wp, S = Wp+1 (max |tap offset|).
    """
    hp, wp = h + 2, w + 2
    L = n * hp * wp
    S = wp + 1
    # flat-index offset of tap (ky, kx) in the padded-image layout
    deltas = [(ky - 1) * wp + (kx - 1) for ky in range(3) for kx in range(3)]

    def conv(a, wmat, bias, out_len):
        # a: (Cin, out_len + 2*S).  Build the (9*Cin, out_len) im2col patch matrix
        # from 9 static lane-offset slices, then one MXU matmul.
        views = [a[:, S + d: S + d + out_len] for d in deltas]
        patches = jnp.concatenate(views, axis=0)
        return jnp.dot(wmat, patches, preferred_element_type=jnp.float32) + bias

    x = x_ref[...]                                   # (8, L + 6*S)
    mask1 = mask_ref[...]                            # (1, L + 4*S)
    mask2 = mask1[:, S: S + L + 2 * S]               # (1, L + 2*S)

    h1 = conv(x, w1_ref[...], b1_ref[...], L + 4 * S)
    h1 = jnp.maximum(h1, 0.0) * mask1                # ReLU + enforce zero padding

    h2 = conv(h1, w2_ref[...], b2_ref[...], L + 2 * S)
    h2 = jnp.maximum(h2, 0.0) * mask2

    h3 = conv(h2, w3_ref[...], b3_ref[...], L)       # (8, L); only row 0 is real
    o_ref[...] = (1.0 / (1.0 + jnp.exp(-h3))).astype(o_ref.dtype)


@jax.jit
def simple_cnn_forward(x_nchw, params):
    """Matches SimpleCNN.forward: relu(conv1) -> relu(conv2) -> sigmoid(conv3)."""
    n, cin, h, w = x_nchw.shape
    assert cin == 3
    hp, wp = h + 2, w + 2
    S = wp + 1
    L = n * hp * wp
    cin_pad = 8

    # ---- activations: (Cin_pad, n*Hp*Wp) lane-dense slab with zero margins 3*S ----
    x = jnp.pad(x_nchw, ((0, 0), (0, cin_pad - cin), (1, 1), (1, 1)))   # (n,8,Hp,Wp)
    x = jnp.transpose(x, (1, 0, 2, 3)).reshape(cin_pad, L)
    x = jnp.pad(x, ((0, 0), (3 * S, 3 * S)))                            # (8, L+6S)

    # ---- interior mask (1, L + 4*S) ----
    i = jnp.arange(hp * wp)
    yy, xx = i // wp, i % wp
    m_img = ((yy >= 1) & (yy <= h) & (xx >= 1) & (xx <= w)).astype(jnp.float32)
    mask = jnp.tile(m_img, n)
    mask = jnp.pad(mask, (2 * S, 2 * S)).reshape(1, L + 4 * S)

    # ---- weights packed to (Cout_pad, 9*Cin_pad); biases (Cout_pad, 1) ----
    def pack(whwio, bias, cin_to, cout_to):
        kh, kw, ci, co = whwio.shape
        whwio = jnp.pad(whwio, ((0, 0), (0, 0), (0, cin_to - ci), (0, cout_to - co)))
        wmat = jnp.transpose(whwio, (3, 0, 1, 2)).reshape(cout_to, kh * kw * cin_to)
        bcol = jnp.pad(bias.reshape(-1), (0, cout_to - co)).reshape(cout_to, 1)
        return wmat, bcol

    w1, b1 = pack(*params["conv1"], cin_to=8, cout_to=8)
    w2, b2 = pack(*params["conv2"], cin_to=8, cout_to=16)
    w3, b3 = pack(*params["conv3"], cin_to=16, cout_to=8)

    kern = functools.partial(_fused_cnn_kernel, n=n, h=h, w=w)
    vmem = pl.BlockSpec(memory_space=pltpu.MemorySpace.VMEM)
    out = pl.pallas_call(
        kern,
        out_shape=jax.ShapeDtypeStruct((8, L), jnp.float32),
        in_specs=[vmem] * 8,
        out_specs=vmem,
    )(x, mask, w1, b1, w2, b2, w3, b3)

    # row 0 holds conv3's single output channel (padded layout) -> NCHW interior
    y = out[0].reshape(n, hp, wp)[:, 1:1 + h, 1:1 + w]
    return y[:, None, :, :]


def init_params(key):
    """Deterministic PyTorch-style (uniform +-1/sqrt(fan_in)) init, HWIO weights."""
    def conv_init(k, cin, cout):
        k1, k2 = jax.random.split(k)
        bound = 1.0 / float(np.sqrt(cin * 9))
        w = jax.random.uniform(k1, (3, 3, cin, cout), jnp.float32, -bound, bound)
        b = jax.random.uniform(k2, (cout,), jnp.float32, -bound, bound)
        return w, b

    k1, k2, k3 = jax.random.split(key, 3)
    return {
        "conv1": conv_init(k1, 3, 8),
        "conv2": conv_init(k2, 8, 16),
        "conv3": conv_init(k3, 16, 1),
    }


def _reference_forward(x_nchw, params):
    """Pure-JAX reference (lax.conv) for correctness checking."""
    x = x_nchw
    dn = ("NCHW", "HWIO", "NCHW")
    for name, act in (("conv1", "relu"), ("conv2", "relu"), ("conv3", "sigmoid")):
        w, b = params[name]
        x = lax.conv_general_dilated(x, w, (1, 1), "SAME", dimension_numbers=dn)
        x = x + b.reshape(1, -1, 1, 1)
        x = jnp.maximum(x, 0.0) if act == "relu" else jax.nn.sigmoid(x)
    return x


if __name__ == "__main__":
    key = jax.random.PRNGKey(0)
    k_x, k_p = jax.random.split(key)

    N, C, H, W = 2, 3, 16, 16
    x = jax.random.normal(k_x, (N, C, H, W), jnp.float32)  # NCHW, like PyTorch
    params = init_params(k_p)

    y = jax.block_until_ready(simple_cnn_forward(x, params))
    assert y.shape == (N, 1, H, W), y.shape

    y_ref = _reference_forward(x, params)
    np.testing.assert_allclose(np.asarray(y), np.asarray(y_ref), rtol=1e-4, atol=1e-5)

    print("KERNEL_OK")
</pallas_src>

<mosaic_0001>
module attributes {stable_mosaic.version = 11 : i64} {
  func.func @_fused_cnn_kernel(%arg0: memref<8x762xf32, #tpu.memory_space<vmem>>, %arg1: memref<1x724xf32, #tpu.memory_space<vmem>>, %arg2: memref<8x72xf32, #tpu.memory_space<vmem>>, %arg3: memref<8x1xf32, #tpu.memory_space<vmem>>, %arg4: memref<16x72xf32, #tpu.memory_space<vmem>>, %arg5: memref<16x1xf32, #tpu.memory_space<vmem>>, %arg6: memref<8x144xf32, #tpu.memory_space<vmem>>, %arg7: memref<8x1xf32, #tpu.memory_space<vmem>>, %arg8: memref<8x648xf32, #tpu.memory_space<vmem>>) attributes {dimension_semantics = [], scalar_prefetch = 0 : i64, scratch_operands = 0 : i64, tpu.core_type = #tpu.core_type<tc>} {
    %c0 = arith.constant 0 : index
    %c0_0 = arith.constant 0 : index
    %0 = vector.load %arg0[%c0, %c0_0] : memref<8x762xf32, #tpu.memory_space<vmem>>, vector<8x762xf32>
    %c0_1 = arith.constant 0 : index
    %c0_2 = arith.constant 0 : index
    %1 = vector.load %arg1[%c0_1, %c0_2] : memref<1x724xf32, #tpu.memory_space<vmem>>, vector<1x724xf32>
    %2 = vector.extract_strided_slice %1 {offsets = [0, 19], sizes = [1, 686], strides = [1, 1]} : vector<1x724xf32> to vector<1x686xf32>
    %c0_3 = arith.constant 0 : index
    %c0_4 = arith.constant 0 : index
    %3 = vector.load %arg2[%c0_3, %c0_4] : memref<8x72xf32, #tpu.memory_space<vmem>>, vector<8x72xf32>
    %c0_5 = arith.constant 0 : index
    %c0_6 = arith.constant 0 : index
    %4 = vector.load %arg3[%c0_5, %c0_6] : memref<8x1xf32, #tpu.memory_space<vmem>>, vector<8x1xf32>
    %5 = vector.extract_strided_slice %0 {offsets = [0, 0], sizes = [8, 724], strides = [1, 1]} : vector<8x762xf32> to vector<8x724xf32>
    %6 = vector.extract_strided_slice %0 {offsets = [0, 1], sizes = [8, 724], strides = [1, 1]} : vector<8x762xf32> to vector<8x724xf32>
    %7 = vector.extract_strided_slice %0 {offsets = [0, 2], sizes = [8, 724], strides = [1, 1]} : vector<8x762xf32> to vector<8x724xf32>
    %8 = vector.extract_strided_slice %0 {offsets = [0, 18], sizes = [8, 724], strides = [1, 1]} : vector<8x762xf32> to vector<8x724xf32>
    %9 = vector.extract_strided_slice %0 {offsets = [0, 19], sizes = [8, 724], strides = [1, 1]} : vector<8x762xf32> to vector<8x724xf32>
    %10 = vector.extract_strided_slice %0 {offsets = [0, 20], sizes = [8, 724], strides = [1, 1]} : vector<8x762xf32> to vector<8x724xf32>
    %11 = vector.extract_strided_slice %0 {offsets = [0, 36], sizes = [8, 724], strides = [1, 1]} : vector<8x762xf32> to vector<8x724xf32>
    %12 = vector.extract_strided_slice %0 {offsets = [0, 37], sizes = [8, 724], strides = [1, 1]} : vector<8x762xf32> to vector<8x724xf32>
    %13 = vector.extract_strided_slice %0 {offsets = [0, 38], sizes = [8, 724], strides = [1, 1]} : vector<8x762xf32> to vector<8x724xf32>
    %14 = tpu.concatenate %5, %6, %7, %8, %9, %10, %11, %12, %13 in 0 : vector<8x724xf32>, vector<8x724xf32>, vector<8x724xf32>, vector<8x724xf32>, vector<8x724xf32>, vector<8x724xf32>, vector<8x724xf32>, vector<8x724xf32>, vector<8x724xf32> -> vector<72x724xf32>
    %cst = arith.constant dense<0.000000e+00> : vector<8x724xf32>
    %15 = tpu.matmul %3, %14, %cst {dimension_numbers = #tpu.dot_dimension_numbers<[1], [0], [0], [1], [0, 0, 1, 1], [], []>} : vector<8x72xf32>, vector<72x724xf32>, vector<8x724xf32> -> vector<8x724xf32>
    %16 = vector.broadcast %4 : vector<8x1xf32> to vector<8x724xf32>
    %17 = arith.addf %15, %16 : vector<8x724xf32>
    %cst_7 = arith.constant 0.000000e+00 : f32
    %18 = vector.broadcast %cst_7 : f32 to vector<8x724xf32>
    %19 = arith.maximumf %17, %18 : vector<8x724xf32>
    %20 = vector.broadcast %1 : vector<1x724xf32> to vector<8x724xf32>
    %21 = arith.mulf %19, %20 : vector<8x724xf32>
    %c0_8 = arith.constant 0 : index
    %c0_9 = arith.constant 0 : index
    %22 = vector.load %arg4[%c0_8, %c0_9] : memref<16x72xf32, #tpu.memory_space<vmem>>, vector<16x72xf32>
    %c0_10 = arith.constant 0 : index
    %c0_11 = arith.constant 0 : index
    %23 = vector.load %arg5[%c0_10, %c0_11] : memref<16x1xf32, #tpu.memory_space<vmem>>, vector<16x1xf32>
    %24 = vector.extract_strided_slice %21 {offsets = [0, 0], sizes = [8, 686], strides = [1, 1]} : vector<8x724xf32> to vector<8x686xf32>
    %25 = vector.extract_strided_slice %21 {offsets = [0, 1], sizes = [8, 686], strides = [1, 1]} : vector<8x724xf32> to vector<8x686xf32>
    %26 = vector.extract_strided_slice %21 {offsets = [0, 2], sizes = [8, 686], strides = [1, 1]} : vector<8x724xf32> to vector<8x686xf32>
    %27 = vector.extract_strided_slice %21 {offsets = [0, 18], sizes = [8, 686], strides = [1, 1]} : vector<8x724xf32> to vector<8x686xf32>
    %28 = vector.extract_strided_slice %21 {offsets = [0, 19], sizes = [8, 686], strides = [1, 1]} : vector<8x724xf32> to vector<8x686xf32>
    %29 = vector.extract_strided_slice %21 {offsets = [0, 20], sizes = [8, 686], strides = [1, 1]} : vector<8x724xf32> to vector<8x686xf32>
    %30 = vector.extract_strided_slice %21 {offsets = [0, 36], sizes = [8, 686], strides = [1, 1]} : vector<8x724xf32> to vector<8x686xf32>
    %31 = vector.extract_strided_slice %21 {offsets = [0, 37], sizes = [8, 686], strides = [1, 1]} : vector<8x724xf32> to vector<8x686xf32>
    %32 = vector.extract_strided_slice %21 {offsets = [0, 38], sizes = [8, 686], strides = [1, 1]} : vector<8x724xf32> to vector<8x686xf32>
    %33 = tpu.concatenate %24, %25, %26, %27, %28, %29, %30, %31, %32 in 0 : vector<8x686xf32>, vector<8x686xf32>, vector<8x686xf32>, vector<8x686xf32>, vector<8x686xf32>, vector<8x686xf32>, vector<8x686xf32>, vector<8x686xf32>, vector<8x686xf32> -> vector<72x686xf32>
    %cst_12 = arith.constant dense<0.000000e+00> : vector<16x686xf32>
    %34 = tpu.matmul %22, %33, %cst_12 {dimension_numbers = #tpu.dot_dimension_numbers<[1], [0], [0], [1], [0, 0, 1, 1], [], []>} : vector<16x72xf32>, vector<72x686xf32>, vector<16x686xf32> -> vector<16x686xf32>
    %35 = vector.broadcast %23 : vector<16x1xf32> to vector<16x686xf32>
    %36 = arith.addf %34, %35 : vector<16x686xf32>
    %cst_13 = arith.constant 0.000000e+00 : f32
    %37 = vector.broadcast %cst_13 : f32 to vector<16x686xf32>
    %38 = arith.maximumf %36, %37 : vector<16x686xf32>
    %39 = vector.broadcast %2 : vector<1x686xf32> to vector<16x686xf32>
    %40 = arith.mulf %38, %39 : vector<16x686xf32>
    %c0_14 = arith.constant 0 : index
    %c0_15 = arith.constant 0 : index
    %41 = vector.load %arg6[%c0_14, %c0_15] : memref<8x144xf32, #tpu.memory_space<vmem>>, vector<8x144xf32>
    %c0_16 = arith.constant 0 : index
    %c0_17 = arith.constant 0 : index
    %42 = vector.load %arg7[%c0_16, %c0_17] : memref<8x1xf32, #tpu.memory_space<vmem>>, vector<8x1xf32>
    %43 = vector.extract_strided_slice %40 {offsets = [0, 0], sizes = [16, 648], strides = [1, 1]} : vector<16x686xf32> to vector<16x648xf32>
    %44 = vector.extract_strided_slice %40 {offsets = [0, 1], sizes = [16, 648], strides = [1, 1]} : vector<16x686xf32> to vector<16x648xf32>
    %45 = vector.extract_strided_slice %40 {offsets = [0, 2], sizes = [16, 648], strides = [1, 1]} : vector<16x686xf32> to vector<16x648xf32>
    %46 = vector.extract_strided_slice %40 {offsets = [0, 18], sizes = [16, 648], strides = [1, 1]} : vector<16x686xf32> to vector<16x648xf32>
    %47 = vector.extract_strided_slice %40 {offsets = [0, 19], sizes = [16, 648], strides = [1, 1]} : vector<16x686xf32> to vector<16x648xf32>
    %48 = vector.extract_strided_slice %40 {offsets = [0, 20], sizes = [16, 648], strides = [1, 1]} : vector<16x686xf32> to vector<16x648xf32>
    %49 = vector.extract_strided_slice %40 {offsets = [0, 36], sizes = [16, 648], strides = [1, 1]} : vector<16x686xf32> to vector<16x648xf32>
    %50 = vector.extract_strided_slice %40 {offsets = [0, 37], sizes = [16, 648], strides = [1, 1]} : vector<16x686xf32> to vector<16x648xf32>
    %51 = vector.extract_strided_slice %40 {offsets = [0, 38], sizes = [16, 648], strides = [1, 1]} : vector<16x686xf32> to vector<16x648xf32>
    %52 = tpu.concatenate %43, %44, %45, %46, %47, %48, %49, %50, %51 in 0 : vector<16x648xf32>, vector<16x648xf32>, vector<16x648xf32>, vector<16x648xf32>, vector<16x648xf32>, vector<16x648xf32>, vector<16x648xf32>, vector<16x648xf32>, vector<16x648xf32> -> vector<144x648xf32>
    %cst_18 = arith.constant dense<0.000000e+00> : vector<8x648xf32>
    %53 = tpu.matmul %41, %52, %cst_18 {dimension_numbers = #tpu.dot_dimension_numbers<[1], [0], [0], [1], [0, 0, 1, 1], [], []>} : vector<8x144xf32>, vector<144x648xf32>, vector<8x648xf32> -> vector<8x648xf32>
    %54 = vector.broadcast %42 : vector<8x1xf32> to vector<8x648xf32>
    %55 = arith.addf %53, %54 : vector<8x648xf32>
    %cst_19 = arith.constant 0.000000e+00 : f32
    %56 = vector.broadcast %cst_19 : f32 to vector<8x648xf32>
    %57 = arith.subf %56, %55 : vector<8x648xf32>
    %58 = math.exp %57 : vector<8x648xf32>
    %cst_20 = arith.constant 1.000000e+00 : f32
    %59 = vector.broadcast %cst_20 : f32 to vector<8x648xf32>
    %60 = arith.addf %59, %58 : vector<8x648xf32>
    %cst_21 = arith.constant 1.000000e+00 : f32
    %61 = vector.broadcast %cst_21 : f32 to vector<8x648xf32>
    %62 = arith.divf %61, %60 : vector<8x648xf32>
    %c0_22 = arith.constant 0 : index
    %c0_23 = arith.constant 0 : index
    %63 = vector.load %arg8[%c0_22, %c0_23] : memref<8x648xf32, #tpu.memory_space<vmem>>, vector<8x648xf32>
    tpu.vector_store %arg8[%c0_22, %c0_23], %62 {strides = array<i32>} : memref<8x648xf32, #tpu.memory_space<vmem>>, vector<8x648xf32>,
    return
  }
}

</mosaic_0001>

<bundles_post_ra>
// kernel: tile.8
= control target key start
LH: loop header
LB: loop body
LE: loop exit
PB: predicated region body
PF: predicated region fallthrough
CT: control target
= control target key end

     0   :  { %s46_s0 = inlined_call_operand.vmem [shape: f32[324], index: 0, kind: input, shape index: {}]   ;;  %s47_s1 = inlined_call_operand.vmem [shape: f32[2,324], index: 1, kind: output, shape index: {}]  }
   0x1   :  { %v4_v0 = vld [vmem:[%s46_s0] ss:$0 sm:$0xff]  ;;  %v14_v1 = vld [vmem:[%s46_s0 + $0x1] ss:$0 sm:$0xff]  ;;  %v16_v2 = vld [vmem:[%s46_s0 + $0x2] ss:$0 sm:$0xff] }
   0x2   :  { %5 = vst [vmem:[%s47_s1] sm:$0x3] %v4_v0  ;;  %15 = vst [vmem:[%s47_s1 + $0x2] sm:$0x3] %v14_v1 }
   0x3   :  { %17 = vst [vmem:[%s47_s1 + $0x4] sm:$0x3] %v16_v2 }

// kernel: tile.9
= control target key start
LH: loop header
LB: loop body
LE: loop exit
PB: predicated region body
PF: predicated region fallthrough
CT: control target
= control target key end

     0   :  { %vm27_vm0 = vcmask 490496   ;;  %vm17_vm1 = vcmask 556032   ;;  %s38_s12 = smov 3  ;;  %s53_s13 = smov 68   ;;  %vm31_vm2 = vcmask 64512   ;;  %vm34_vm3 = vcmask 1048096   ;;  %s90_s0 = inlined_call_operand.vmem [shape: f32[2,324], index: 0, kind: input, shape index: {}]   ;;  %s91_s1 = inlined_call_operand.vmem [shape: f32[648], index: 1, kind: output, shape index: {}]  }
   0x1   :  { %v46_v0 = vld [vmem:[%s90_s0 + $0x4] sm:$0x3]  ;;  %v47_v1 = vld [vmem:[%s90_s0 + $0x2] sm:$0x3]  ;;  %v13_v2 = vld [vmem:[%s90_s0] sm:$0x3] }
   0x2   :  { %8 = vst [vmem:[#allocation0 + $0x10] sm:$0x3] %v46_v0  ;;  %12 = vst [vmem:[#allocation0 + $0x8] sm:$0x3] %v47_v1  ;;  %s20_s0 = smov 3 }
   0x3   :  { %14 = vst [vmem:[#allocation0] sm:$0x3] %v13_v2 }
   0x9   :  { %v24_v3 = vld [vmem:[#allocation0 + $0x11] sm:$0x1]   ;;  %v16_v7 = vld [vmem:[#allocation0 + $0x10] sm:$0x1]  }
   0xa   :  { %v26_v4 = vld [vmem:[#allocation0 + $0x1] ss:$8 sm:$0x7]   ;;  %v21_v6 = vld [vmem:[#allocation0] ss:$8 sm:%s20_s0]  }
   0xb   :  { %v28_v5 = vsel %vm27_vm0, %v26_v4, %v24_v3  ;;  %22 = vst [vmem:[%s91_s1] sm:$0x3] %v21_v6   ;;  %48 = vst.msk [vmem:[%s91_s1 + $0x2] sm:$0x1] %vm17_vm1, %v16_v7   ;;  %v39_v8 = vld [vmem:[#allocation0 + $0x1] ss:$8 sm:%s38_s12]  }
   0xc   :  { %29 = vrot.lane.b32.xlu0 %v28_v5, %s53_s13 }
  0x10   :  { %40 = vrot.lane.b32.xlu0 %v39_v8, %s53_s13 }
  0x7e   :  { %v30_v9 = vpop.permute.xlu0 %29  }
  0x7f   :  { %49 = vst.msk [vmem:[%s91_s1 + $0x5] sm:$0x1] %vm31_vm2, %v30_v9  }
  0x80   :  { %50 = vst.msk [vmem:[%s91_s1 + $0x2] sm:$0x7] %vm34_vm3, %v30_v9  }
  0x82   :  { %v41_v10 = vpop.permute.xlu0 %40  }
  0x83   :  { %51 = vst.msk [vmem:[%s91_s1 + $0x3] sm:$0x3] %vm17_vm1, %v41_v10  }

// kernel: squeeze.1
= control target key start
LH: loop header
LB: loop body
LE: loop exit
PB: predicated region body
PF: predicated region fallthrough
CT: control target
= control target key end

     0   :  { %s386_s10 = smov 118   ;;  %s387_s11 = smov 114   ;;  %vm213_vm0 = vcmask 965632   ;;  %vm227_vm1 = vcmask 982016   ;;  %vm241_vm2 = vcmask 998400   ;;  %vm255_vm3 = vcmask 1014784   ;;  %s708_s0 = inlined_call_operand.vmem [shape: f32[648], index: 0, kind: input, shape index: {}]   ;;  %s709_s1 = inlined_call_operand.vmem [shape: f32[2,18,18], index: 1, kind: output, shape index: {}]  }
   0x1   :  { %v278_v0 = vld [vmem:[%s708_s0 + $0x4] sm:$0x1]   ;;  %v282_v1 = vld [vmem:[%s708_s0 + $0x2] sm:$0x1]   ;;  %v280_v2 = vld [vmem:[%s708_s0 + $0x3] sm:$0x1]  }
   0x2   :  { %7 = vrot.lane.b32.xlu0 %v278_v0, %s386_s10  ;;  %21 = vrot.lane.b32.xlu1 %v282_v1, %s387_s11  ;;  %v284_v3 = vld [vmem:[%s708_s0 + $0x1] sm:$0x1]   ;;  %s388_s16 = smov 116   ;;  %s389_s17 = smov 112   ;;  %v33_v4 = vld [vmem:[%s708_s0] sm:$0x1]  }
   0x3   :  { %v287_v5 = vld [vmem:[%s708_s0 + $0x4] sm:$0x1]   ;;  %v333_v7 = vld [vmem:[%s708_s0 + $0x5] sm:$0x1]   ;;  %v336_v8 = vld [vmem:[%s708_s0 + $0x3] sm:$0x1]  }
   0x4   :  { %v332_v6 = vld [vmem:[%s708_s0 + $0x4] sm:$0x1]   ;;  %s390_s30 = smov 110   ;;  %s391_s2 = smov 100   ;;  %v340_v12 = vld [vmem:[%s708_s0 + $0x2] sm:$0x1]  }
   0x5   :  { %v337_v9 = vld [vmem:[%s708_s0 + $0x4] sm:$0x1]   ;;  %v214_v10 = vsel %vm213_vm0, %v333_v7, %v332_v6  ;;  %v341_v13 = vld [vmem:[%s708_s0 + $0x3] sm:$0x1]   ;;  %v344_v14 = vld [vmem:[%s708_s0 + $0x1] sm:$0x1]  }
   0x6   :  { %14 = vrot.lane.b32.xlu0 %v280_v2, %s388_s16  ;;  %28 = vrot.lane.b32.xlu1 %v284_v3, %s389_s17  ;;  %v228_v11 = vsel %vm227_vm1, %v337_v9, %v336_v8  ;;  %v345_v15 = vld [vmem:[%s708_s0 + $0x2] sm:$0x1]   ;;  %s392_s11 = smov 10   ;;  %s393_s12 = smov 8   ;;  %v242_v16 = vsel %vm241_vm2, %v341_v13, %v340_v12  ;;  %v265_v18 = vld [vmem:[%s708_s0] sm:$0x1]  }
   0x7   :  { %v256_v17 = vsel %vm255_vm3, %v345_v15, %v344_v14  ;;  %v348_v19 = vld [vmem:[%s708_s0 + $0x1] sm:$0x1]   ;;  %vm268_vm4 = vcmask 1031168   ;;  %s394_s17 = smov 6   ;;  %s395_s18 = smov 4   ;;  %vm3_vm5 = vcmask 146432  }
   0x8   :  { %v269_v20 = vsel %vm268_vm4, %v348_v19, %v265_v18  ;;  %v289_v21 = vld [vmem:[%s708_s0 + $0x3] sm:$0x1]   ;;  %s396_s21 = smov 2   ;;  %s397_s22 = smov 98   ;;  %v291_v22 = vld [vmem:[%s708_s0 + $0x2] sm:$0x1]  }
   0x9   :  { %v293_v23 = vld [vmem:[%s708_s0 + $0x1] sm:$0x1]   ;;  %s398_s27 = smov 96   ;;  %s399_s28 = smov 94   ;;  %v67_v24 = vld [vmem:[%s708_s0] sm:$0x1]  }
   0xa   :  { %34 = vrot.lane.b32.xlu0 %v33_v4, %s390_s30  ;;  %41 = vrot.lane.b32.xlu1 %v287_v5, %s391_s2  ;;  %v296_v25 = vld [vmem:[%s708_s0 + $0x4] sm:$0x1]   ;;  %s400_s4 = smov 92   ;;  %s401_s5 = smov 82   ;;  %v298_v26 = vld [vmem:[%s708_s0 + $0x3] sm:$0x1]  }
   0xb   :  { %v300_v27 = vld [vmem:[%s708_s0 + $0x2] sm:$0x1]   ;;  %s402_s10 = smov 80   ;;  %v302_v28 = vld [vmem:[%s708_s0 + $0x1] sm:$0x1]   ;;  %s404_s16 = smov 76  }
   0xc   :  { %v101_v29 = vld [vmem:[%s708_s0] sm:$0x1]   ;;  %v305_v30 = vld [vmem:[%s708_s0 + $0x4] sm:$0x1]   ;;  %v307_v31 = vld [vmem:[%s708_s0 + $0x3] sm:$0x1]  }
   0xd   :  { %s407_s23 = smov 62   ;;  %v309_v32 = vld [vmem:[%s708_s0 + $0x2] sm:$0x1]   ;;  %v311_v33 = vld [vmem:[%s708_s0 + $0x1] sm:$0x1]   ;;  %s409_s29 = smov 58  }
   0xe   :  { %215 = vrot.lane.b32.xlu0 %v214_v10, %s392_s11  ;;  %229 = vrot.lane.b32.xlu1 %v228_v11, %s393_s12  ;;  %s403_s11 = smov 78   ;;  %v135_v34 = vld [vmem:[%s708_s0] sm:$0x1]   ;;  %v314_v35 = vld [vmem:[%s708_s0 + $0x4] sm:$0x1]   ;;  %s411_s6 = smov 46  }
   0xf   :  { %v316_v36 = vld [vmem:[%s708_s0 + $0x3] sm:$0x1]   ;;  %v318_v37 = vld [vmem:[%s708_s0 + $0x2] sm:$0x1]   ;;  %s413_s12 = smov 42   ;;  %vm217_vm6 = vcmask 80896  }
  0x10   :  { %v320_v38 = vld [vmem:[%s708_s0 + $0x1] sm:$0x1]   ;;  %v169_v39 = vld [vmem:[%s708_s0] sm:$0x1]   ;;  %v323_v41 = vld [vmem:[%s708_s0 + $0x4] sm:$0x1]  }
  0x11   :  { %v2_v40 = vld [vmem:[%s708_s0] sm:$0x1]   ;;  %v325_v42 = vld [vmem:[%s708_s0 + $0x3] sm:$0x1]   ;;  %v327_v43 = vld [vmem:[%s708_s0 + $0x2] sm:$0x1]  }
  0x12   :  { %243 = vrot.lane.b32.xlu0 %v242_v16, %s394_s17  ;;  %257 = vrot.lane.b32.xlu1 %v256_v17, %s395_s18  ;;  %s405_s17 = smov 74   ;;  %4 = vst.msk [vmem:[%s709_s1] sm:$0x1] %vm3_vm5, %v2_v40   ;;  %v329_v44 = vld [vmem:[%s708_s0 + $0x1] sm:$0x1]   ;;  %vm231_vm7 = vcmask 64512  }
  0x13   :  { %v203_v45 = vld [vmem:[%s708_s0] sm:$0x1]   ;;  %s420_s0 = smov 20   ;;  %vm220_vm8 = vcmask 146512   ;;  %vm234_vm9 = vcmask 146496   ;;  %vm245_vm10 = vcmask 48128  }
  0x14   :  { %vm259_vm11 = vcmask 31744   ;;  %vm248_vm12 = vcmask 146480   ;;  %vm262_vm13 = vcmask 146464   ;;  %vm272_vm14 = vcmask 15360  }
  0x15   :  { %vm275_vm15 = vcmask 146448  }
  0x16   :  { %270 = vrot.lane.b32.xlu0 %v269_v20, %s396_s21  ;;  %48 = vrot.lane.b32.xlu1 %v289_v21, %s397_s22  ;;  %s406_s22 = smov 64   ;;  %s414_s21 = smov 40  }
  0x1a   :  { %55 = vrot.lane.b32.xlu0 %v291_v22, %s398_s27  ;;  %62 = vrot.lane.b32.xlu1 %v293_v23, %s399_s28  ;;  %s408_s28 = smov 60   ;;  %s416_s27 = smov 28  }
  0x1e   :  { %68 = vrot.lane.b32.xlu0 %v67_v24, %s400_s4  ;;  %75 = vrot.lane.b32.xlu1 %v296_v25, %s401_s5  ;;  %s410_s5 = smov 56   ;;  %s418_s4 = smov 24  }
  0x22   :  { %82 = vrot.lane.b32.xlu0 %v298_v26, %s402_s10  ;;  %89 = vrot.lane.b32.xlu1 %v300_v27, %s403_s11  ;;  %s412_s11 = smov 44  }
  0x26   :  { %96 = vrot.lane.b32.xlu0 %v302_v28, %s404_s16  ;;  %102 = vrot.lane.b32.xlu1 %v101_v29, %s405_s17 }
  0x2a   :  { %109 = vrot.lane.b32.xlu0 %v305_v30, %s406_s22  ;;  %116 = vrot.lane.b32.xlu1 %v307_v31, %s407_s23  ;;  %s415_s22 = smov 38  }
  0x2e   :  { %123 = vrot.lane.b32.xlu0 %v309_v32, %s408_s28  ;;  %130 = vrot.lane.b32.xlu1 %v311_v33, %s409_s29  ;;  %s417_s28 = smov 26  }
  0x32   :  { %136 = vrot.lane.b32.xlu0 %v135_v34, %s410_s5  ;;  %143 = vrot.lane.b32.xlu1 %v314_v35, %s411_s6  ;;  %s419_s5 = smov 22  }
  0x36   :  { %150 = vrot.lane.b32.xlu0 %v316_v36, %s412_s11  ;;  %157 = vrot.lane.b32.xlu1 %v318_v37, %s413_s12 }
  0x3a   :  { %164 = vrot.lane.b32.xlu0 %v320_v38, %s414_s21  ;;  %170 = vrot.lane.b32.xlu1 %v169_v39, %s415_s22 }
  0x3e   :  { %177 = vrot.lane.b32.xlu0 %v323_v41, %s416_s27  ;;  %184 = vrot.lane.b32.xlu1 %v325_v42, %s417_s28 }
  0x42   :  { %191 = vrot.lane.b32.xlu0 %v327_v43, %s418_s4  ;;  %198 = vrot.lane.b32.xlu1 %v329_v44, %s419_s5 }
  0x46   :  { %204 = vrot.lane.b32.xlu0 %v203_v45, %s420_s0 }
  0x74   :  { %v8_v46 = vpop.permute.xlu0 %7   ;;  %v22_v47 = vpop.permute.xlu1 %21  }
  0x75   :  { %279 = vst.msk [vmem:[%s709_s1 + $0x23] sm:$0x1] %vm3_vm5, %v8_v46   ;;  %283 = vst.msk [vmem:[%s709_s1 + $0xf] sm:$0x1] %vm3_vm5, %v22_v47  }
  0x78   :  { %v15_v48 = vpop.permute.xlu0 %14   ;;  %v29_v49 = vpop.permute.xlu1 %28  }
  0x79   :  { %281 = vst.msk [vmem:[%s709_s1 + $0x1c] sm:$0x1] %vm3_vm5, %v15_v48   ;;  %285 = vst.msk [vmem:[%s709_s1 + $0x8] sm:$0x1] %vm3_vm5, %v29_v49  }
  0x7c   :  { %v35_v50 = vpop.permute.xlu0 %34   ;;  %v42_v51 = vpop.permute.xlu1 %41  }
  0x7d   :  { %286 = vst.msk [vmem:[%s709_s1 + $0x1] sm:$0x1] %vm3_vm5, %v35_v50   ;;  %288 = vst.msk [vmem:[%s709_s1 + $0x24] sm:$0x1] %vm3_vm5, %v42_v51  }
  0x80   :  { %v216_v52 = vpop.permute.xlu0 %215   ;;  %v230_v53 = vpop.permute.xlu1 %229  }
  0x81   :  { %334 = vst.msk [vmem:[%s709_s1 + $0x29] sm:$0x1] %vm217_vm6, %v216_v52  }
  0x82   :  { %338 = vst.msk [vmem:[%s709_s1 + $0x22] sm:$0x1] %vm231_vm7, %v230_v53  }
  0x83   :  { %335 = vst.msk [vmem:[%s709_s1 + $0x29] sm:$0x1] %vm220_vm8, %v216_v52  }
  0x84   :  { %339 = vst.msk [vmem:[%s709_s1 + $0x22] sm:$0x1] %vm234_vm9, %v230_v53   ;;  %v244_v54 = vpop.permute.xlu0 %243   ;;  %v258_v55 = vpop.permute.xlu1 %257  }
  0x85   :  { %342 = vst.msk [vmem:[%s709_s1 + $0x1b] sm:$0x1] %vm245_vm10, %v244_v54  }
  0x86   :  { %346 = vst.msk [vmem:[%s709_s1 + $0xe] sm:$0x1] %vm259_vm11, %v258_v55  }
  0x87   :  { %343 = vst.msk [vmem:[%s709_s1 + $0x1b] sm:$0x1] %vm248_vm12, %v244_v54  }
  0x88   :  { %347 = vst.msk [vmem:[%s709_s1 + $0xe] sm:$0x1] %vm262_vm13, %v258_v55   ;;  %v271_v56 = vpop.permute.xlu0 %270   ;;  %v49_v57 = vpop.permute.xlu1 %48  }
  0x89   :  { %349 = vst.msk [vmem:[%s709_s1 + $0x7] sm:$0x1] %vm272_vm14, %v271_v56  }
  0x8a   :  { %290 = vst.msk [vmem:[%s709_s1 + $0x1d] sm:$0x1] %vm3_vm5, %v49_v57  }
  0x8b   :  { %350 = vst.msk [vmem:[%s709_s1 + $0x7] sm:$0x1] %vm275_vm15, %v271_v56  }
  0x8c   :  { %v56_v58 = vpop.permute.xlu0 %55   ;;  %v63_v59 = vpop.permute.xlu1 %62  }
  0x8d   :  { %292 = vst.msk [vmem:[%s709_s1 + $0x10] sm:$0x1] %vm3_vm5, %v56_v58   ;;  %294 = vst.msk [vmem:[%s709_s1 + $0x9] sm:$0x1] %vm3_vm5, %v63_v59  }
  0x90   :  { %v69_v60 = vpop.permute.xlu0 %68   ;;  %v76_v61 = vpop.permute.xlu1 %75  }
  0x91   :  { %295 = vst.msk [vmem:[%s709_s1 + $0x2] sm:$0x1] %vm3_vm5, %v69_v60   ;;  %297 = vst.msk [vmem:[%s709_s1 + $0x25] sm:$0x1] %vm3_vm5, %v76_v61  }
  0x94   :  { %v83_v62 = vpop.permute.xlu0 %82   ;;  %v90_v63 = vpop.permute.xlu1 %89  }
  0x95   :  { %299 = vst.msk [vmem:[%s709_s1 + $0x1e] sm:$0x1] %vm3_vm5, %v83_v62   ;;  %301 = vst.msk [vmem:[%s709_s1 + $0x11] sm:$0x1] %vm3_vm5, %v90_v63  }
  0x98   :  { %v97_v0 = vpop.permute.xlu0 %96   ;;  %v103_v1 = vpop.permute.xlu1 %102  }
  0x99   :  { %303 = vst.msk [vmem:[%s709_s1 + $0xa] sm:$0x1] %vm3_vm5, %v97_v0   ;;  %304 = vst.msk [vmem:[%s709_s1 + $0x3] sm:$0x1] %vm3_vm5, %v103_v1  }
  0x9c   :  { %v110_v2 = vpop.permute.xlu0 %109   ;;  %v117_v3 = vpop.permute.xlu1 %116  }
  0x9d   :  { %306 = vst.msk [vmem:[%s709_s1 + $0x26] sm:$0x1] %vm3_vm5, %v110_v2   ;;  %308 = vst.msk [vmem:[%s709_s1 + $0x1f] sm:$0x1] %vm3_vm5, %v117_v3  }
  0xa0   :  { %v124_v4 = vpop.permute.xlu0 %123   ;;  %v131_v5 = vpop.permute.xlu1 %130  }
  0xa1   :  { %310 = vst.msk [vmem:[%s709_s1 + $0x18] sm:$0x1] %vm3_vm5, %v124_v4   ;;  %312 = vst.msk [vmem:[%s709_s1 + $0xb] sm:$0x1] %vm3_vm5, %v131_v5  }
  0xa4   :  { %v137_v6 = vpop.permute.xlu0 %136   ;;  %v144_v7 = vpop.permute.xlu1 %143  }
  0xa5   :  { %313 = vst.msk [vmem:[%s709_s1 + $0x4] sm:$0x1] %vm3_vm5, %v137_v6   ;;  %315 = vst.msk [vmem:[%s709_s1 + $0x27] sm:$0x1] %vm3_vm5, %v144_v7  }
  0xa8   :  { %v151_v8 = vpop.permute.xlu0 %150   ;;  %v158_v9 = vpop.permute.xlu1 %157  }
  0xa9   :  { %317 = vst.msk [vmem:[%s709_s1 + $0x20] sm:$0x1] %vm3_vm5, %v151_v8   ;;  %319 = vst.msk [vmem:[%s709_s1 + $0x19] sm:$0x1] %vm3_vm5, %v158_v9  }
  0xac   :  { %v165_v10 = vpop.permute.xlu0 %164   ;;  %v171_v11 = vpop.permute.xlu1 %170  }
  0xad   :  { %321 = vst.msk [vmem:[%s709_s1 + $0xc] sm:$0x1] %vm3_vm5, %v165_v10   ;;  %322 = vst.msk [vmem:[%s709_s1 + $0x5] sm:$0x1] %vm3_vm5, %v171_v11  }
  0xb0   :  { %v178_v12 = vpop.permute.xlu0 %177   ;;  %v185_v13 = vpop.permute.xlu1 %184  }
  0xb1   :  { %324 = vst.msk [vmem:[%s709_s1 + $0x28] sm:$0x1] %vm3_vm5, %v178_v12   ;;  %326 = vst.msk [vmem:[%s709_s1 + $0x21] sm:$0x1] %vm3_vm5, %v185_v13  }
  0xb4   :  { %v192_v14 = vpop.permute.xlu0 %191   ;;  %v199_v15 = vpop.permute.xlu1 %198  }
  0xb5   :  { %328 = vst.msk [vmem:[%s709_s1 + $0x1a] sm:$0x1] %vm3_vm5, %v192_v14   ;;  %330 = vst.msk [vmem:[%s709_s1 + $0xd] sm:$0x1] %vm3_vm5, %v199_v15  }
  0xb8   :  { %v205_v16 = vpop.permute.xlu0 %204  }
  0xb9   :  { %331 = vst.msk [vmem:[%s709_s1 + $0x6] sm:$0x1] %vm3_vm5, %v205_v16  }

// kernel: simple_cnn_forward.1
= control target key start
LH: loop header
LB: loop body
LE: loop exit
PB: predicated region body
PF: predicated region fallthrough
CT: control target
= control target key end

     0   :  { %s2293_s13 = smov 126   ;;  %s2294_s14 = smov 127   ;;  %v2300_v8 = vmov 0.0   ;;  %v2302_v11 = vmov 0   ;;  %vm56_vm0 = vcmask 1039360   ;;  %vm80_vm1 = vcmask 1031168   ;;  %s3191_s0 = inlined_call_operand.vmem [shape: f32[8,762], index: 0, kind: input, shape index: {}]   ;;  %s3192_s3 = inlined_call_operand.vmem [shape: f32[8,1], index: 3, kind: input, shape index: {}]   ;;  %s3193_s2 = inlined_call_operand.vmem [shape: f32[8,72], index: 2, kind: input, shape index: {}]   ;;  %s3194_s1 = inlined_call_operand.vmem [shape: f32[1,724], index: 1, kind: input, shape index: {}]   ;;  %s3195_s5 = inlined_call_operand.vmem [shape: f32[16,1], index: 5, kind: input, shape index: {}]   ;;  %s3196_s4 = inlined_call_operand.vmem [shape: f32[16,72], index: 4, kind: input, shape index: {}]   ;;  %s3197_s6 = inlined_call_operand.vmem [shape: f32[8,144], index: 6, kind: input, shape index: {}]   ;;  %s3198_s7 = inlined_call_operand.vmem [shape: f32[8,1], index: 7, kind: input, shape index: {}]   ;;  %s3199_s8 = inlined_call_operand.vmem [shape: f32[8,648], index: 8, kind: output, shape index: {}]  }
   0x1   :  { %v2351_v0 = vld [vmem:[%s3191_s0 + $0x8] sm:$0xff]  ;;  %v2356_v1 = vld [vmem:[%s3191_s0 + $0x10] sm:$0xff]  ;;  %v2361_v2 = vld [vmem:[%s3191_s0] sm:$0xff]  ;;  %s2295_s15 = smov 110   ;;  %s2296_s16 = smov 108   ;;  %309 = vmatprep.mubr.f32.mxu1 %v2300_v8  ;;  %451 = vmatprep.mubr.f32.mxu0 %v2300_v8  ;;  %vm104_vm2 = vcmask 900096  }
   0x2   :  { %v1877_v3 = vpack.i.bf16 %v2356_v1, %v2351_v0  ;;  %v2368_v4 = vld [vmem:[%s3191_s0 + $0x18] sm:$0xff]  ;;  %s2297_s17 = smov 109   ;;  %s2298_s18 = smov 91   ;;  %v2388_v6 = vld [vmem:[%s3191_s0 + $0x20] sm:$0xff]  ;;  %v2393_v7 = vld [vmem:[%s3191_s0 + $0x28] sm:$0xff]  ;;  %1957 = vset.pattern.permute.xlu0 %v2302_v11  ;;  %2028 = vset.pattern.permute.xlu1 %v2302_v11  ;;  %vm152_vm3 = vcmask 883712  }
   0x3   :  { %v1872_v5 = vpack.i.bf16 %v2368_v4, %v2361_v2  ;;  %s2299_s19 = smov 92   ;;  %v1922_v9 = vpack.i.bf16 %v2393_v7, %v2388_v6  ;;  %s2301_s24 = smov 90   ;;  %v1942_v10 = vpack.i.bf16 %v2388_v6, %v2368_v4  ;;  %v37_v12 = vld [vmem:[%s3192_s3] sm:$0xff]  ;;  %vm128_vm4 = vcmask 891904  }
   0x4   :  { %1878 = vrot.lane.b32.xlu1 %v1877_v3, %s2293_s13  ;;  %1868 = vrot.lane.b32.xlu0 %v1877_v3, %s2294_s14  ;;  %vm200_vm5 = vcmask 744448   ;;  %vm176_vm6 = vcmask 752640   ;;  %vm224_vm7 = vcmask 736256   ;;  %vm241_vm8 = vcmask 588800  }
   0x5   :  { %vm1377_vm9 = vcmask 130048   ;;  %vm1635_vm10 = vcmask 64512  }
   0x8   :  { %1883 = vrot.lane.b32.xlu1 %v1877_v3, %s2295_s15  ;;  %1873 = vrot.lane.b32.xlu0 %v1872_v5, %s2294_s14 }
   0xc   :  { %1893 = vrot.lane.b32.xlu1 %v1872_v5, %s2295_s15  ;;  %1888 = vrot.lane.b32.xlu0 %v1872_v5, %s2293_s13 }
  0x10   :  { %1903 = vrot.lane.b32.xlu1 %v1877_v3, %s2296_s16  ;;  %1898 = vrot.lane.b32.xlu0 %v1877_v3, %s2297_s17 }
  0x14   :  { %140 = vrot.lane.b32.xlu1 %v2361_v2, %s2296_s16  ;;  %1908 = vrot.lane.b32.xlu0 %v1872_v5, %s2297_s17 }
  0x18   :  { %1918 = vrot.lane.b32.xlu1 %v1877_v3, %s2298_s18  ;;  %1913 = vrot.lane.b32.xlu0 %v1877_v3, %s2299_s19 }
  0x1c   :  { %188 = vrot.lane.b32.xlu1 %v2361_v2, %s2298_s18  ;;  %164 = vrot.lane.b32.xlu0 %v2361_v2, %s2299_s19 }
  0x20   :  { %214 = vrot.lane.b32.xlu1 %v2351_v0, %s2301_s24  ;;  %1923 = vrot.lane.b32.xlu0 %v1922_v9, %s2294_s14 }
  0x24   :  { %212 = vrot.lane.b32.xlu1 %v2361_v2, %s2301_s24  ;;  %216 = vrot.lane.b32.xlu0 %v2356_v1, %s2301_s24 }
  0x28   :  { %1933 = vrot.lane.b32.xlu1 %v1922_v9, %s2295_s15  ;;  %1928 = vrot.lane.b32.xlu0 %v1922_v9, %s2293_s13 }
  0x2c   :  { %1943 = vrot.lane.b32.xlu1 %v1942_v10, %s2296_s16  ;;  %1938 = vrot.lane.b32.xlu0 %v1922_v9, %s2297_s17 }
  0x30   :  { %1948 = vrot.lane.b32.xlu1 %v1942_v10, %s2299_s19  ;;  %150 = vrot.lane.b32.xlu0 %v2393_v7, %s2296_s16 }
  0x34   :  { %174 = vrot.lane.b32.xlu1 %v2393_v7, %s2299_s19  ;;  %1953 = vrot.lane.b32.xlu0 %v1942_v10, %s2298_s18 }
  0x38   :  { %218 = vrot.lane.b32.xlu1 %v2368_v4, %s2301_s24  ;;  %198 = vrot.lane.b32.xlu0 %v2393_v7, %s2298_s18 }
  0x3c   :  { %222 = vrot.lane.b32.xlu1 %v2393_v7, %s2301_s24  ;;  %220 = vrot.lane.b32.xlu0 %v2388_v6, %s2301_s24 }
  0x40   :  { %238 = vperm.xlu0 %1957, %v37_v12  }
  0x76   :  { %v2433_v13 = vpop.permute.xlu1 %1878  ;;  %v2435_v14 = vpop.permute.xlu0 %1868 }
  0x77   :  { %v1881_v15 = vunpack.i.h.bf16 %v2433_v13  ;;  %v1880_v16 = vunpack.i.l.bf16 %v2433_v13  ;;  %v1871_v17 = vunpack.i.h.bf16 %v2435_v14  ;;  %v1870_v18 = vunpack.i.l.bf16 %v2435_v14  ;;  %v2521_v14 = vld [vmem:[%s3193_s2] sm:$0xff] }
  0x79   :  { %v58_v19 = vsel %vm56_vm0, %v1870_v18, %v1871_v17  ;;  %v82_v26 = vsel %vm80_vm1, %v1880_v16, %v1881_v15 }
  0x7a   :  { %v2444_v20 = vpop.permute.xlu1 %1883  ;;  %v2446_v21 = vpop.permute.xlu0 %1873  ;;  %v1653_v22 = vpack.c.bf16 %v58_v19, %v2351_v0 }
  0x7b   :  { %v1886_v23 = vunpack.i.h.bf16 %v2444_v20  ;;  %v1885_v24 = vunpack.i.l.bf16 %v2444_v20  ;;  %v1875_v25 = vunpack.i.l.bf16 %v2446_v21  ;;  %v1876_v5 = vunpack.i.h.bf16 %v2446_v21 }
  0x7c   :  { %1654 = vmatprep.subr.bf16.mxu1 %v1653_v22 }
  0x7d   :  { %v57_v27 = vsel %vm56_vm0, %v1875_v25, %v1870_v18  ;;  %v106_v28 = vsel %vm104_vm2, %v1885_v24, %v1886_v23  ;;  %v59_v22 = vsel %vm56_vm0, %v1871_v17, %v1876_v5 }
  0x7e   :  { %v2459_v29 = vpop.permute.xlu1 %1893  ;;  %v2461_v30 = vpop.permute.xlu0 %1888  ;;  %v1655_v31 = vpack.c.bf16 %v57_v27, %v2361_v2  ;;  %v1657_v32 = vpack.c.bf16 %v106_v28, %v82_v26 }
  0x7f   :  { %v1895_v33 = vunpack.i.l.bf16 %v2459_v29  ;;  %v1890_v34 = vunpack.i.l.bf16 %v2461_v30  ;;  %v1891_v21 = vunpack.i.h.bf16 %v2461_v30 }
  0x80   :  { %1656 = vmatpush1.bf16.msra.mxu1 %v1655_v31 }
  0x81   :  { %1658 = vmatprep.subr.bf16.mxu1 %v1657_v32  ;;  %v81_v35 = vsel %vm80_vm1, %v1890_v34, %v1880_v16  ;;  %v105_v36 = vsel %vm104_vm2, %v1895_v33, %v1885_v24  ;;  %v1896_v24 = vunpack.i.h.bf16 %v2459_v29  ;;  %v1671_v29 = vpack.c.bf16 %v59_v22, %v2356_v1 }
  0x82   :  { %v2468_v37 = vpop.permute.xlu1 %1903  ;;  %v2470_v38 = vpop.permute.xlu0 %1898  ;;  %v1659_v39 = vpack.c.bf16 %v105_v36, %v81_v35  ;;  %v83_v30 = vsel %vm80_vm1, %v1881_v15, %v1891_v21 }
  0x83   :  { %v1906_v40 = vunpack.i.h.bf16 %v2468_v37  ;;  %v1905_v41 = vunpack.i.l.bf16 %v2468_v37  ;;  %v1901_v42 = vunpack.i.h.bf16 %v2470_v38  ;;  %v1900_v43 = vunpack.i.l.bf16 %v2470_v38 }
  0x84   :  { %1660 = vmatpush1.bf16.msra.mxu1 %v1659_v39 }
  0x85   :  { %v130_v44 = vsel %vm128_vm4, %v1900_v43, %v1901_v42  ;;  %v154_v45 = vsel %vm152_vm3, %v1905_v41, %v1906_v40 }
  0x86   :  { %v141_v46 = vpop.permute.xlu1 %140  ;;  %v2482_v47 = vpop.permute.xlu0 %1908  ;;  %v1661_v48 = vpack.c.bf16 %v154_v45, %v130_v44 }
  0x87   :  { %v153_v49 = vsel %vm152_vm3, %v141_v46, %v1905_v41  ;;  %v1910_v50 = vunpack.i.l.bf16 %v2482_v47  ;;  %v1911_v1 = vunpack.i.h.bf16 %v2482_v47 }
  0x88   :  { %1662 = vmatprep.subr.bf16.mxu1 %v1661_v48 }
  0x89   :  { %v129_v51 = vsel %vm128_vm4, %v1910_v50, %v1900_v43  ;;  %v131_v50 = vsel %vm128_vm4, %v1901_v42, %v1911_v1 }
  0x8a   :  { %v2487_v52 = vpop.permute.xlu1 %1918  ;;  %v2489_v53 = vpop.permute.xlu0 %1913  ;;  %v1663_v54 = vpack.c.bf16 %v153_v49, %v129_v51 }
  0x8b   :  { %v1921_v55 = vunpack.i.h.bf16 %v2487_v52  ;;  %v1920_v56 = vunpack.i.l.bf16 %v2487_v52  ;;  %v1916_v57 = vunpack.i.h.bf16 %v2489_v53  ;;  %v1915_v58 = vunpack.i.l.bf16 %v2489_v53 }
  0x8c   :  { %1664 = vmatpush1.bf16.msra.mxu1 %v1663_v54 }
  0x8d   :  { %v178_v59 = vsel %vm176_vm6, %v1915_v58, %v1916_v57  ;;  %v202_v60 = vsel %vm200_vm5, %v1920_v56, %v1921_v55 }
  0x8e   :  { %v189_v61 = vpop.permute.xlu1 %188  ;;  %v165_v62 = vpop.permute.xlu0 %164  ;;  %v1665_v63 = vpack.c.bf16 %v202_v60, %v178_v59 }
  0x8f   :  { %v201_v0 = vsel %vm200_vm5, %v189_v61, %v1920_v56  ;;  %v177_v2 = vsel %vm176_vm6, %v165_v62, %v1915_v58 }
  0x90   :  { %v1667_v3 = vpack.c.bf16 %v201_v0, %v177_v2  ;;  %1666 = vmatprep.subr.bf16.mxu1 %v1665_v63 }
  0x92   :  { %v215_v9 = vpop.permute.xlu1 %214  ;;  %v1924_v10 = vpop.permute.xlu0 %1923  ;;  %1668 = vmatpush1.bf16.msra.mxu1 %v1667_v3 }
  0x93   :  { %v1925_v11 = vunpack.i.l.bf16 %v1924_v10  ;;  %v1926_v12 = vunpack.i.h.bf16 %v1924_v10 }
  0x95   :  { %v1685_v16 = vpack.c.bf16 %v1926_v12, %v2393_v7  ;;  %v61_v18 = vsel %vm56_vm0, %v1925_v11, %v1926_v12  ;;  %v60_v19 = vsel %vm56_vm0, %v1876_v5, %v1925_v11 }
  0x96   :  { %v213_v25 = vpop.permute.xlu1 %212  ;;  %v2512_v26 = vpop.permute.xlu0 %216  ;;  %v1687_v27 = vpack.c.bf16 %v61_v18, %v2388_v6  ;;  %v1669_v17 = vpack.c.bf16 %v60_v19, %v2368_v4  ;;  %v107_v6 = vsel %vm104_vm2, %v1886_v23, %v1896_v24 }
  0x97   :  { %1686 = vmatprep.subr.bf16.mxu0 %v1685_v16  ;;  %v226_v7 = vsel %vm224_vm7, %v215_v9, %v2512_v26  ;;  %v225_v28 = vsel %vm224_vm7, %v213_v25, %v215_v9  ;;  %v1675_v44 = vpack.c.bf16 %v107_v6, %v83_v30 }
  0x98   :  { %261 = vmatprep.subr.mxu1 %v226_v7  ;;  %1688 = vmatpush1.bf16.msra.mxu0 %v1687_v27 }
  0x99   :  { %262 = vmatpush1.msra.mxu1 %v225_v28  ;;  %v465_v28 = vlaneseq }
  0x9a   :  { %v1934_v31 = vpop.permute.xlu1 %1933  ;;  %v1929_v32 = vpop.permute.xlu0 %1928  ;;  %1670 = vmatprep.subr.bf16.mxu1 %v1669_v17  ;;  %1641 = vmatmul.mubr.msk.f32.vlgmr.msra.gmra.mrb[0].mxu1 %vm241_vm8, %v2521_v14 }
  0x9b   :  { %v1936_v33 = vunpack.i.h.bf16 %v1934_v31  ;;  %v1935_v34 = vunpack.i.l.bf16 %v1934_v31  ;;  %v1931_v4 = vunpack.i.h.bf16 %v1929_v32  ;;  %v1930_v35 = vunpack.i.l.bf16 %v1929_v32  ;;  %1672 = vmatpush1.bf16.msra.mxu1 %v1671_v29  ;;  %380 = vmatprep.mubr.f32.mxu1 %v2300_v8 }
  0x9c   :  { %v466_v17 = vshrl.u32 %v465_v28, 7 }
  0x9d   :  { %v1689_v20 = vpack.c.bf16 %v1936_v33, %v1931_v4  ;;  %v84_v13 = vsel %vm80_vm1, %v1891_v21, %v1930_v35  ;;  %v108_v15 = vsel %vm104_vm2, %v1896_v24, %v1935_v34  ;;  %v85_v23 = vsel %vm80_vm1, %v1930_v35, %v1931_v4 }
  0x9e   :  { %v1944_v36 = vpop.permute.xlu1 %1943  ;;  %v1939_v39 = vpop.permute.xlu0 %1938  ;;  %v1673_v41 = vpack.c.bf16 %v108_v15, %v84_v13  ;;  %v109_v43 = vsel %vm104_vm2, %v1935_v34, %v1936_v33  ;;  %v487_v29 = vsub.s32 5, %v466_v17  ;;  %v471_v30 = vsub.s32 1, %v466_v17 }
  0x9f   :  { %v1946_v45 = vunpack.i.h.bf16 %v1944_v36  ;;  %v1945_v46 = vunpack.i.l.bf16 %v1944_v36  ;;  %v1941_v48 = vunpack.i.h.bf16 %v1939_v39  ;;  %v1940_v49 = vunpack.i.l.bf16 %v1939_v39  ;;  %1690 = vmatprep.subr.bf16.mxu0 %v1689_v20 }
  0xa0   :  { %1674 = vmatprep.subr.bf16.mxu1 %v1673_v41  ;;  %v1691_v47 = vpack.c.bf16 %v109_v43, %v85_v23  ;;  %v483_v20 = vsub.s32 4, %v466_v17 }
  0xa1   :  { %v155_v51 = vsel %vm152_vm3, %v1906_v40, %v1945_v46  ;;  %1676 = vmatpush1.bf16.msra.mxu1 %v1675_v44  ;;  %v132_v54 = vsel %vm128_vm4, %v1911_v1, %v1940_v49  ;;  %v156_v56 = vsel %vm152_vm3, %v1945_v46, %v1946_v45  ;;  %v133_v42 = vsel %vm128_vm4, %v1940_v49, %v1941_v48 }
  0xa2   :  { %1692 = vmatpush1.bf16.msra.mxu0 %v1691_v47  ;;  %v1949_v58 = vpop.permute.xlu1 %1948  ;;  %v151_v59 = vpop.permute.xlu0 %150  ;;  %v1677_v60 = vpack.c.bf16 %v156_v56, %v132_v54  ;;  %v1679_v61 = vpack.c.bf16 %v155_v51, %v131_v50  ;;  %v475_v1 = vsub.s32 2, %v466_v17 }
  0xa3   :  { %v1951_v62 = vunpack.i.h.bf16 %v1949_v58  ;;  %v157_v63 = vsel %vm152_vm3, %v1946_v45, %v151_v59  ;;  %v1693_v38 = vpack.c.bf16 %v151_v59, %v1941_v48  ;;  %v1950_v0 = vunpack.i.l.bf16 %v1949_v58 }
  0xa4   :  { %1678 = vmatprep.subr.bf16.mxu1 %v1677_v60  ;;  %v1695_v37 = vpack.c.bf16 %v157_v63, %v133_v42  ;;  %v479_v58 = vsub.s32 3, %v466_v17  ;;  %v467_v60 = vsub.s32 0, %v466_v17 }
  0xa5   :  { %1680 = vmatpush1.bf16.msra.mxu1 %v1679_v61  ;;  %1694 = vmatprep.subr.bf16.mxu0 %v1693_v38  ;;  %v180_v9 = vsel %vm176_vm6, %v1950_v0, %v1951_v62  ;;  %v179_v10 = vsel %vm176_vm6, %v1916_v57, %v1950_v0 }
  0xa6   :  { %v175_v40 = vpop.permute.xlu1 %174  ;;  %v1954_v2 = vpop.permute.xlu0 %1953  ;;  %1696 = vmatpush1.bf16.msra.mxu0 %v1695_v37 }
  0xa7   :  { %v1956_v3 = vunpack.i.h.bf16 %v1954_v2  ;;  %v1955_v5 = vunpack.i.l.bf16 %v1954_v2  ;;  %v181_v24 = vsel %vm176_vm6, %v1951_v62, %v175_v40  ;;  %v504_v2 = vld [vmem:[%s3195_s5 + $0x8] sm:$0xff] }
  0xa9   :  { %v203_v11 = vsel %vm200_vm5, %v1921_v55, %v1955_v5  ;;  %v204_v12 = vsel %vm200_vm5, %v1955_v5, %v1956_v3 }
  0xaa   :  { %v1683_v16 = vpack.c.bf16 %v203_v11, %v179_v10  ;;  %v219_v18 = vpop.permute.xlu1 %218  ;;  %v199_v19 = vpop.permute.xlu0 %198  ;;  %v1681_v22 = vpack.c.bf16 %v204_v12, %v180_v9 }
  0xab   :  { %v205_v21 = vsel %vm200_vm5, %v1956_v3, %v199_v19  ;;  %v1697_v25 = vpack.c.bf16 %v199_v19, %v175_v40  ;;  %v227_v55 = vsel %vm224_vm7, %v2512_v26, %v219_v18  ;;  %v35_v26 = vld [vmem:[%s3194_s1] sm:$0x3f] }
  0xac   :  { %v1699_v27 = vpack.c.bf16 %v205_v21, %v181_v24  ;;  %1682 = vmatprep.subr.bf16.mxu1 %v1681_v22  ;;  %v2572_v6 = vrot.slane %v35_v26, %v487_v29  ;;  %v2574_v4 = vrot.slane %v35_v26, %v471_v30  ;;  %v2581_v23 = vrot.slane %v35_v26, %v475_v1  ;;  %v503_v40 = vld [vmem:[%s3195_s5] sm:$0xff] }
  0xad   :  { %1684 = vmatpush1.bf16.msra.mxu1 %v1683_v16  ;;  %1698 = vmatprep.subr.bf16.mxu0 %v1697_v25  ;;  %v484_v43 = vrot.slane %v35_v26, %v483_v20  ;;  %v480_v62 = vrot.slane %v35_v26, %v479_v58  ;;  %v468_v38 = vrot.slane %v35_v26, %v467_v60 }
  0xae   :  { %v223_v53 = vpop.permute.xlu1 %222  ;;  %v221_v57 = vpop.permute.xlu0 %220  ;;  %1700 = vmatpush1.bf16.msra.mxu0 %v1699_v27 }
  0xaf   :  { %v228_v52 = vsel %vm224_vm7, %v219_v18, %v221_v57  ;;  %403 = vmatprep.subr.mxu0 %v223_v53  ;;  %v229_v7 = vsel %vm224_vm7, %v221_v57, %v223_v53 }
  0xb0   :  { %332 = vmatprep.subr.mxu1 %v228_v52 }
  0xb1   :  { %333 = vmatpush1.msra.mxu1 %v227_v55 }
  0xb2   :  { %1642 = vmatmul.mubr.msk.f32.vlgmr.msra.gmra.mrb[2].mxu1 %vm241_vm8, %v2521_v14  ;;  %404 = vmatpush1.msra.mxu0 %v229_v7 }
  0xb3   :  { %1643 = vmatmul.mubr.msk.f32.vlgmr.msra.gmra.mrb[0].mxu0 %vm241_vm8, %v2521_v14  ;;  %775 = vmatprep.mubr.f32.mxu1 %v2300_v8 }
  0xb4   :  { %852 = vmatprep.mubr.f32.mxu0 %v2300_v8 }
  0xbf   :  { %v239_v31 = vpop.permute.xlu0 %238 }
 0x16d   :  { %v311_v32 = vpop.f32.mrb[0].mxu1 }
 0x16e   :  { %v313_v33 = vpop.f32.mrb[1].mxu1  ;;  %v312_v59 = vadd.f32 %v311_v32, %v239_v31 }
 0x16f   :  { %v314_v34 = vadd.f32 %v313_v33, %v239_v31 }
 0x170   :  { %v458_v63 = vmax.f32 %v312_v59, 0.0 }
 0x171   :  { %v459_v14 = vmax.f32 %v314_v34, 0.0 }
 0x172   :  { %v2606_v37 = vmul.f32 %v468_v38, %v458_v63 }
 0x173   :  { %v2577_v35 = vmul.f32 %v2574_v4, %v459_v14 }
 0x175   :  { %674 = vrot.lane.b32.xlu1 %v2577_v35, %s2301_s24 }
 0x185   :  { %v382_v13 = vpop.f32.mrb[2].mxu1 }
 0x186   :  { %v383_v15 = vadd.f32 %v382_v13, %v239_v31  ;;  %v384_v36 = vpop.f32.mrb[3].mxu1  ;;  %v453_v39 = vpop.f32.mrb[0].mxu0 }
 0x187   :  { %v454_v41 = vadd.f32 %v453_v39, %v239_v31  ;;  %v455_v44 = vpop.f32.mrb[1].mxu0  ;;  %v385_v56 = vadd.f32 %v384_v36, %v239_v31 }
 0x188   :  { %v460_v45 = vmax.f32 %v383_v15, 0.0  ;;  %v456_v46 = vadd.f32 %v455_v44, %v239_v31 }
 0x189   :  { %v462_v48 = vmax.f32 %v454_v41, 0.0  ;;  %v461_v61 = vmax.f32 %v385_v56, 0.0 }
 0x18a   :  { %v2584_v49 = vmul.f32 %v2581_v23, %v460_v45  ;;  %v463_v47 = vmax.f32 %v456_v46, 0.0 }
 0x18b   :  { %v2586_v50 = vmul.f32 %v484_v43, %v462_v48  ;;  %v2602_v42 = vmul.f32 %v480_v62, %v461_v61 }
 0x18c   :  { %v2589_v51 = vmul.f32 %v2572_v6, %v463_v47  ;;  %v1958_v54 = vpack.i.bf16 %v2584_v49, %v2577_v35 }
 0x18d   :  { %519 = vrot.lane.b32.xlu0 %v2586_v50, %s2294_s14  ;;  %v1993_v0 = vpack.i.bf16 %v2602_v42, %v2606_v37 }
 0x18e   :  { %1959 = vrot.lane.b32.xlu1 %v1958_v54, %s2294_s14 }
 0x191   :  { %542 = vrot.lane.b32.xlu0 %v2586_v50, %s2293_s13 }
 0x192   :  { %1964 = vrot.lane.b32.xlu1 %v1958_v54, %s2293_s13 }
 0x195   :  { %565 = vrot.lane.b32.xlu0 %v2586_v50, %s2295_s15 }
 0x196   :  { %1974 = vrot.lane.b32.xlu1 %v1958_v54, %s2297_s17 }
 0x199   :  { %588 = vrot.lane.b32.xlu0 %v2586_v50, %s2297_s17 }
 0x19a   :  { %1984 = vrot.lane.b32.xlu1 %v1958_v54, %s2299_s19 }
 0x19d   :  { %611 = vrot.lane.b32.xlu0 %v2586_v50, %s2296_s16 }
 0x19e   :  { %1994 = vrot.lane.b32.xlu1 %v1993_v0, %s2294_s14 }
 0x1a1   :  { %634 = vrot.lane.b32.xlu0 %v2586_v50, %s2299_s19 }
 0x1a2   :  { %1999 = vrot.lane.b32.xlu1 %v1993_v0, %s2293_s13 }
 0x1a5   :  { %657 = vrot.lane.b32.xlu0 %v2586_v50, %s2298_s18 }
 0x1a6   :  { %2004 = vrot.lane.b32.xlu1 %v1993_v0, %s2295_s15 }
 0x1a9   :  { %1969 = vrot.lane.b32.xlu0 %v1958_v54, %s2295_s15 }
 0x1aa   :  { %2009 = vrot.lane.b32.xlu1 %v1993_v0, %s2297_s17 }
 0x1ad   :  { %1979 = vrot.lane.b32.xlu0 %v1958_v54, %s2296_s16 }
 0x1ae   :  { %2014 = vrot.lane.b32.xlu1 %v1993_v0, %s2296_s16 }
 0x1b1   :  { %1989 = vrot.lane.b32.xlu0 %v1958_v54, %s2298_s18 }
 0x1b2   :  { %2019 = vrot.lane.b32.xlu1 %v1993_v0, %s2299_s19 }
 0x1b5   :  { %676 = vrot.lane.b32.xlu0 %v2584_v49, %s2301_s24 }
 0x1b6   :  { %2024 = vrot.lane.b32.xlu1 %v1993_v0, %s2298_s18 }
 0x1b9   :  { %678 = vrot.lane.b32.xlu0 %v2602_v42, %s2301_s24 }
 0x1ba   :  { %672 = vrot.lane.b32.xlu1 %v2606_v37, %s2301_s24 }
 0x1bd   :  { %521 = vrot.lane.b32.xlu0 %v2589_v51, %s2294_s14 }
 0x1be   :  { %680 = vrot.lane.b32.xlu1 %v2586_v50, %s2301_s24 }
 0x1c1   :  { %567 = vrot.lane.b32.xlu0 %v2589_v51, %s2295_s15 }
 0x1c2   :  { %544 = vrot.lane.b32.xlu1 %v2589_v51, %s2293_s13 }
 0x1c5   :  { %613 = vrot.lane.b32.xlu0 %v2589_v51, %s2296_s16 }
 0x1c6   :  { %590 = vrot.lane.b32.xlu1 %v2589_v51, %s2297_s17 }
 0x1c9   :  { %659 = vrot.lane.b32.xlu0 %v2589_v51, %s2298_s18 }
 0x1ca   :  { %636 = vrot.lane.b32.xlu1 %v2589_v51, %s2299_s19 }
 0x1cd   :  { %697 = vperm.xlu0 %1957, %v503_v40  }
 0x1ce   :  { %682 = vrot.lane.b32.xlu1 %v2589_v51, %s2301_s24 }
 0x1d1   :  { %956 = vrot.lane.b32.xlu0 %v2574_v4, %s2297_s17 }
 0x1d2   :  { %702 = vperm.xlu1 %2028, %v504_v2  }
 0x1d5   :  { %960 = vrot.lane.b32.xlu0 %v480_v62, %s2297_s17 }
 0x1d6   :  { %958 = vrot.lane.b32.xlu1 %v2581_v23, %s2297_s17 }
 0x1d9   :  { %962 = vrot.lane.b32.xlu0 %v484_v43, %s2297_s17 }
 0x1da   :  { %954 = vrot.lane.b32.xlu1 %v468_v38, %s2297_s17 }
 0x1de   :  { %964 = vrot.lane.b32.xlu1 %v2572_v6, %s2297_s17 }
 0x1e7   :  { %v2666_v3 = vpop.permute.xlu1 %674 }
 0x1ff   :  { %v2668_v5 = vpop.permute.xlu0 %519 }
 0x200   :  { %v1960_v9 = vpop.permute.xlu1 %1959 }
 0x201   :  { %v1962_v10 = vunpack.i.h.bf16 %v1960_v9  ;;  %v1961_v11 = vunpack.i.l.bf16 %v1960_v9 }
 0x203   :  { %v2670_v12 = vpop.permute.xlu0 %542  ;;  %v524_v16 = vsel %vm56_vm0, %v1961_v11, %v1962_v10 }
 0x204   :  { %v1965_v18 = vpop.permute.xlu1 %1964  ;;  %v1701_v19 = vpack.c.bf16 %v524_v16, %v2577_v35 }
 0x205   :  { %v1967_v14 = vunpack.i.h.bf16 %v1965_v18  ;;  %v1966_v35 = vunpack.i.l.bf16 %v1965_v18 }
 0x206   :  { %1702 = vmatprep.subr.bf16.mxu1 %v1701_v19 }
 0x207   :  { %v2674_v22 = vpop.permute.xlu0 %565  ;;  %v547_v61 = vsel %vm80_vm1, %v1966_v35, %v1967_v14 }
 0x208   :  { %v1975_v24 = vpop.permute.xlu1 %1974 }
 0x209   :  { %v1977_v1 = vunpack.i.h.bf16 %v1975_v24  ;;  %v1976_v20 = vunpack.i.l.bf16 %v1975_v24 }
 0x20b   :  { %v2676_v21 = vpop.permute.xlu0 %588 }
 0x20c   :  { %v2678_v25 = vpop.permute.xlu1 %1984 }
 0x20d   :  { %v1987_v0 = vunpack.i.h.bf16 %v2678_v25  ;;  %v1986_v40 = vunpack.i.l.bf16 %v2678_v25 }
 0x20f   :  { %v2680_v27 = vpop.permute.xlu0 %611 }
 0x210   :  { %v1995_v53 = vpop.permute.xlu1 %1994 }
 0x211   :  { %v1997_v57 = vunpack.i.h.bf16 %v1995_v53  ;;  %v1996_v52 = vunpack.i.l.bf16 %v1995_v53 }
 0x213   :  { %v525_v55 = vsel %vm56_vm0, %v1962_v10, %v1997_v57  ;;  %v523_v7 = vsel %vm56_vm0, %v1996_v52, %v1961_v11  ;;  %v2684_v28 = vpop.permute.xlu0 %634  ;;  %v526_v17 = vsel %vm56_vm0, %v1997_v57, %v2668_v5 }
 0x214   :  { %v1719_v29 = vpack.c.bf16 %v525_v55, %v2584_v49  ;;  %v1703_v26 = vpack.c.bf16 %v523_v7, %v2606_v37  ;;  %v2000_v6 = vpop.permute.xlu1 %1999  ;;  %v1717_v30 = vpack.c.bf16 %v526_v17, %v2602_v42  ;;  %v593_v37 = vsel %vm128_vm4, %v1976_v20, %v1977_v1 }
 0x215   :  { %v2002_v31 = vunpack.i.h.bf16 %v2000_v6  ;;  %v2001_v34 = vunpack.i.l.bf16 %v2000_v6 }
 0x216   :  { %1704 = vmatpush1.bf16.msra.mxu1 %v1703_v26  ;;  %1718 = vmatprep.subr.bf16.mxu0 %v1717_v30 }
 0x217   :  { %v2691_v32 = vpop.permute.xlu0 %657  ;;  %1720 = vmatpush1.bf16.msra.mxu0 %v1719_v29  ;;  %v549_v15 = vsel %vm80_vm1, %v2002_v31, %v2670_v12  ;;  %v548_v45 = vsel %vm80_vm1, %v1967_v14, %v2002_v31  ;;  %v546_v46 = vsel %vm80_vm1, %v2001_v34, %v1966_v35  ;;  %v639_v31 = vsel %vm176_vm6, %v1986_v40, %v1987_v0 }
 0x218   :  { %v2005_v33 = vpop.permute.xlu1 %2004 }
 0x219   :  { %v2007_v4 = vunpack.i.h.bf16 %v2005_v33  ;;  %v2006_v36 = vunpack.i.l.bf16 %v2005_v33 }
 0x21b   :  { %v1970_v13 = vpop.permute.xlu0 %1969  ;;  %v572_v23 = vsel %vm104_vm2, %v2007_v4, %v2674_v22 }
 0x21c   :  { %v1972_v39 = vunpack.i.h.bf16 %v1970_v13  ;;  %v1971_v41 = vunpack.i.l.bf16 %v1970_v13  ;;  %v2010_v43 = vpop.permute.xlu1 %2009  ;;  %v1721_v44 = vpack.c.bf16 %v572_v23, %v549_v15 }
 0x21d   :  { %v2012_v48 = vunpack.i.h.bf16 %v2010_v43  ;;  %v2011_v54 = vunpack.i.l.bf16 %v2010_v43 }
 0x21e   :  { %v569_v49 = vsel %vm104_vm2, %v2006_v36, %v1971_v41  ;;  %v571_v47 = vsel %vm104_vm2, %v1972_v39, %v2007_v4  ;;  %1722 = vmatprep.subr.bf16.mxu0 %v1721_v44  ;;  %v570_v56 = vsel %vm104_vm2, %v1971_v41, %v1972_v39 }
 0x21f   :  { %v1707_v58 = vpack.c.bf16 %v569_v49, %v546_v46  ;;  %v1723_v59 = vpack.c.bf16 %v571_v47, %v548_v45  ;;  %v1980_v60 = vpop.permute.xlu0 %1979  ;;  %v1705_v42 = vpack.c.bf16 %v570_v56, %v547_v61  ;;  %v594_v10 = vsel %vm128_vm4, %v1977_v1, %v2012_v48 }
 0x220   :  { %v1982_v62 = vunpack.i.h.bf16 %v1980_v60  ;;  %v1981_v63 = vunpack.i.l.bf16 %v1980_v60  ;;  %v2015_v38 = vpop.permute.xlu1 %2014  ;;  %v592_v11 = vsel %vm128_vm4, %v2011_v54, %v1976_v20  ;;  %v595_v18 = vsel %vm128_vm4, %v2012_v48, %v2676_v21 }
 0x221   :  { %v2017_v2 = vunpack.i.h.bf16 %v2015_v38  ;;  %v2016_v9 = vunpack.i.l.bf16 %v2015_v38  ;;  %1724 = vmatpush1.bf16.msra.mxu0 %v1723_v59  ;;  %1706 = vmatprep.subr.bf16.mxu1 %v1705_v42 }
 0x222   :  { %v616_v16 = vsel %vm152_vm3, %v1981_v63, %v1982_v62  ;;  %1708 = vmatpush1.bf16.msra.mxu1 %v1707_v58  ;;  %v501_v58 = vld [vmem:[%s3196_s4] sm:$0xff] }
 0x223   :  { %v617_v19 = vsel %vm152_vm3, %v1982_v62, %v2017_v2  ;;  %v615_v24 = vsel %vm152_vm3, %v2016_v9, %v1981_v63  ;;  %v1990_v53 = vpop.permute.xlu0 %1989  ;;  %v1709_v25 = vpack.c.bf16 %v616_v16, %v593_v37  ;;  %v618_v57 = vsel %vm152_vm3, %v2017_v2, %v2680_v27 }
 0x224   :  { %v1711_v52 = vpack.c.bf16 %v615_v24, %v592_v11  ;;  %v1727_v55 = vpack.c.bf16 %v617_v19, %v594_v10  ;;  %v1992_v7 = vunpack.i.h.bf16 %v1990_v53  ;;  %v1991_v17 = vunpack.i.l.bf16 %v1990_v53  ;;  %v2020_v29 = vpop.permute.xlu1 %2019 }
 0x225   :  { %1710 = vmatprep.subr.bf16.mxu1 %v1709_v25  ;;  %v1725_v26 = vpack.c.bf16 %v618_v57, %v595_v18  ;;  %v2022_v6 = vunpack.i.h.bf16 %v2020_v29  ;;  %v2021_v30 = vunpack.i.l.bf16 %v2020_v29 }
 0x226   :  { %v662_v33 = vsel %vm200_vm5, %v1991_v17, %v1992_v7  ;;  %1712 = vmatpush1.bf16.msra.mxu1 %v1711_v52 }
 0x227   :  { %1726 = vmatprep.subr.bf16.mxu0 %v1725_v26  ;;  %v677_v34 = vpop.permute.xlu0 %676  ;;  %v1713_v4 = vpack.c.bf16 %v662_v33, %v639_v31  ;;  %v640_v20 = vsel %vm176_vm6, %v1987_v0, %v2022_v6  ;;  %v638_v13 = vsel %vm176_vm6, %v2021_v30, %v1986_v40  ;;  %v641_v39 = vsel %vm176_vm6, %v2022_v6, %v2684_v28 }
 0x228   :  { %1728 = vmatpush1.bf16.msra.mxu0 %v1727_v55  ;;  %v2025_v14 = vpop.permute.xlu1 %2024  ;;  %v685_v48 = vsel %vm224_vm7, %v2666_v3, %v677_v34 }
 0x229   :  { %v2027_v35 = vunpack.i.h.bf16 %v2025_v14  ;;  %v2026_v1 = vunpack.i.l.bf16 %v2025_v14  ;;  %1714 = vmatprep.subr.bf16.mxu1 %v1713_v4 }
 0x22b   :  { %v663_v15 = vsel %vm200_vm5, %v1992_v7, %v2027_v35  ;;  %v661_v23 = vsel %vm200_vm5, %v2026_v1, %v1991_v17  ;;  %v679_v36 = vpop.permute.xlu0 %678  ;;  %v664_v41 = vsel %vm200_vm5, %v2027_v35, %v2691_v32 }
 0x22c   :  { %v1715_v43 = vpack.c.bf16 %v661_v23, %v638_v13  ;;  %v1731_v44 = vpack.c.bf16 %v663_v15, %v640_v20  ;;  %v673_v45 = vpop.permute.xlu1 %672  ;;  %v1729_v46 = vpack.c.bf16 %v664_v41, %v641_v39  ;;  %v686_v62 = vsel %vm224_vm7, %v677_v34, %v679_v36 }
 0x22d   :  { %v684_v59 = vsel %vm224_vm7, %v673_v45, %v2666_v3 }
 0x22e   :  { %1716 = vmatpush1.bf16.msra.mxu1 %v1715_v43  ;;  %1730 = vmatprep.subr.bf16.mxu0 %v1729_v46 }
 0x22f   :  { %v522_v49 = vpop.permute.xlu0 %521  ;;  %727 = vmatprep.subr.mxu1 %v685_v48  ;;  %1732 = vmatpush1.bf16.msra.mxu0 %v1731_v44 }
 0x230   :  { %v527_v47 = vsel %vm56_vm0, %v2668_v5, %v522_v49  ;;  %v1733_v54 = vpack.c.bf16 %v522_v49, %v2589_v51  ;;  %v681_v56 = vpop.permute.xlu1 %680 }
 0x231   :  { %v1735_v60 = vpack.c.bf16 %v527_v47, %v2586_v50  ;;  %v687_v61 = vsel %vm224_vm7, %v679_v36, %v681_v56  ;;  %v502_v50 = vld [vmem:[%s3196_s4 + $0x8] sm:$0xff] }
 0x232   :  { %728 = vmatpush1.msra.mxu1 %v684_v59  ;;  %804 = vmatprep.subr.mxu0 %v687_v61 }
 0x233   :  { %v568_v63 = vpop.permute.xlu0 %567  ;;  %1644 = vmatmul.mubr.msk.f32.vlgmr.msra.gmra.mrb[4].mxu1 %vm241_vm8, %v501_v58  ;;  %805 = vmatpush1.msra.mxu0 %v686_v62 }
 0x234   :  { %v573_v51 = vsel %vm104_vm2, %v2674_v22, %v568_v63  ;;  %1734 = vmatprep.subr.bf16.mxu1 %v1733_v54  ;;  %v545_v5 = vpop.permute.xlu1 %544  ;;  %1646 = vmatmul.mubr.msk.f32.vlgmr.msra.gmra.mrb[2].mxu0 %vm241_vm8, %v501_v58 }
 0x235   :  { %v550_v3 = vsel %vm80_vm1, %v2670_v12, %v545_v5  ;;  %v1737_v38 = vpack.c.bf16 %v568_v63, %v545_v5  ;;  %1736 = vmatpush1.bf16.msra.mxu1 %v1735_v60  ;;  %781 = vmatprep.mubr.f32.mxu1 %v2300_v8 }
 0x236   :  { %v1739_v42 = vpack.c.bf16 %v573_v51, %v550_v3  ;;  %858 = vmatprep.mubr.f32.mxu0 %v2300_v8 }
 0x237   :  { %v614_v37 = vpop.permute.xlu0 %613  ;;  %1645 = vmatmul.mubr.msk.f32.gmra.mrb[6].mxu1 %vm241_vm8, %v502_v50  ;;  %1738 = vmatprep.subr.bf16.mxu1 %v1737_v38 }
 0x238   :  { %v619_v22 = vsel %vm152_vm3, %v2680_v27, %v614_v37  ;;  %v591_v0 = vpop.permute.xlu1 %590  ;;  %1647 = vmatmul.mubr.msk.f32.gmra.mrb[4].mxu0 %vm241_vm8, %v502_v50  ;;  %929 = vmatprep.mubr.f32.mxu1 %v2300_v8 }
 0x239   :  { %v596_v12 = vsel %vm128_vm4, %v2676_v21, %v591_v0  ;;  %v1741_v40 = vpack.c.bf16 %v614_v37, %v591_v0  ;;  %1740 = vmatpush1.bf16.msra.mxu1 %v1739_v42 }
 0x23a   :  { %v1743_v2 = vpack.c.bf16 %v619_v22, %v596_v12 }
 0x23b   :  { %v660_v9 = vpop.permute.xlu0 %659  ;;  %1742 = vmatprep.subr.bf16.mxu1 %v1741_v40 }
 0x23c   :  { %v665_v10 = vsel %vm200_vm5, %v2691_v32, %v660_v9  ;;  %v637_v11 = vpop.permute.xlu1 %636 }
 0x23d   :  { %v642_v27 = vsel %vm176_vm6, %v2684_v28, %v637_v11  ;;  %v1745_v16 = vpack.c.bf16 %v660_v9, %v637_v11  ;;  %1744 = vmatpush1.bf16.msra.mxu1 %v1743_v2 }
 0x23e   :  { %v1747_v18 = vpack.c.bf16 %v665_v10, %v642_v27 }
 0x23f   :  { %1746 = vmatprep.subr.bf16.mxu1 %v1745_v16 }
 0x240   :  { %v683_v19 = vpop.permute.xlu1 %682 }
 0x241   :  { %1748 = vmatpush1.bf16.msra.mxu1 %v1747_v18  ;;  %v688_v21 = vsel %vm224_vm7, %v681_v56, %v683_v19 }
 0x242   :  { %881 = vmatprep.subr.mxu1 %v683_v19 }
 0x245   :  { %882 = vmatpush1.msra.mxu1 %v688_v21 }
 0x246   :  { %1648 = vmatmul.mubr.msk.f32.vlgmr.msra.gmra.mrb[8].mxu1 %vm241_vm8, %v501_v58 }
 0x247   :  { %935 = vmatprep.mubr.f32.mxu1 %v2300_v8 }
 0x24a   :  { %1649 = vmatmul.mubr.msk.f32.gmra.mrb[10].mxu1 %vm241_vm8, %v502_v50 }
 0x24c   :  { %v2764_v32 = vpop.permute.xlu0 %697 }
 0x250   :  { %v957_v24 = vpop.permute.xlu0 %956 }
 0x251   :  { %v2766_v28 = vpop.permute.xlu1 %702 }
 0x254   :  { %v961_v53 = vpop.permute.xlu0 %960 }
 0x255   :  { %v959_v25 = vpop.permute.xlu1 %958 }
 0x256   :  { %v968_v30 = vsel %vm128_vm4, %v959_v25, %v961_v53  ;;  %v967_v1 = vsel %vm128_vm4, %v957_v24, %v959_v25 }
 0x258   :  { %v963_v52 = vpop.permute.xlu0 %962 }
 0x259   :  { %v955_v29 = vpop.permute.xlu1 %954  ;;  %v969_v14 = vsel %vm128_vm4, %v961_v53, %v963_v52 }
 0x25a   :  { %v966_v20 = vsel %vm128_vm4, %v955_v29, %v957_v24  ;;  %v991_v29 = vld [vmem:[%s3198_s7] sm:$0xff] }
 0x25d   :  { %v965_v37 = vpop.permute.xlu1 %964 }
 0x25e   :  { %v970_v2 = vsel %vm128_vm4, %v963_v52, %v965_v37 }
 0x306   :  { %v777_v57 = vpop.f32.mrb[4].mxu1 }
 0x307   :  { %v778_v55 = vadd.f32 %v777_v57, %v2764_v32  ;;  %v779_v7 = vpop.f32.mrb[5].mxu1  ;;  %v854_v17 = vpop.f32.mrb[2].mxu0 }
 0x308   :  { %v780_v26 = vadd.f32 %v779_v7, %v2764_v32  ;;  %v855_v8 = vadd.f32 %v854_v17, %v2764_v32  ;;  %v856_v6 = vpop.f32.mrb[3].mxu0  ;;  %v2832_v17 = vld [vmem:[%s3197_s6 + $0x8] sm:$0xff] }
 0x309   :  { %v942_v31 = vmax.f32 %v778_v55, 0.0  ;;  %v857_v33 = vadd.f32 %v856_v6, %v2764_v32  ;;  %1650 = vmatprep.mubr.msk.f32.mxu0 %vm1377_vm9, %v2832_v17  ;;  %1651 = vmatprep.mubr.msk.f32.mxu1 %vm1377_vm9, %v2832_v17 }
 0x30a   :  { %v943_v34 = vmax.f32 %v780_v26, 0.0  ;;  %v944_v4 = vmax.f32 %v855_v8, 0.0  ;;  %v783_v35 = vpop.f32.mrb[6].mxu1 }
 0x30b   :  { %v945_v13 = vmax.f32 %v857_v33, 0.0  ;;  %v784_v15 = vadd.f32 %v783_v35, %v2766_v28  ;;  %v785_v23 = vpop.f32.mrb[7].mxu1  ;;  %v860_v36 = vpop.f32.mrb[4].mxu0  ;;  %v977_v46 = vmul.f32 %v966_v20, %v942_v31 }
 0x30c   :  { %v978_v39 = vmul.f32 %v967_v1, %v943_v34  ;;  %v979_v41 = vmul.f32 %v968_v30, %v944_v4  ;;  %v786_v43 = vadd.f32 %v785_v23, %v2766_v28  ;;  %v861_v44 = vadd.f32 %v860_v36, %v2766_v28  ;;  %v862_v45 = vpop.f32.mrb[5].mxu0 }
 0x30d   :  { %v980_v48 = vmul.f32 %v969_v14, %v945_v13  ;;  %v948_v49 = vmax.f32 %v784_v15, 0.0  ;;  %v863_v47 = vadd.f32 %v862_v45, %v2766_v28 }
 0x30e   :  { %v949_v54 = vmax.f32 %v786_v43, 0.0  ;;  %v950_v56 = vmax.f32 %v861_v44, 0.0  ;;  %v2034_v58 = vpack.i.bf16 %v979_v41, %v978_v39 }
 0x30f   :  { %v983_v59 = vmul.f32 %v966_v20, %v948_v49  ;;  %v951_v60 = vmax.f32 %v863_v47, 0.0 }
 0x310   :  { %v984_v61 = vmul.f32 %v967_v1, %v949_v54  ;;  %v985_v62 = vmul.f32 %v968_v30, %v950_v56  ;;  %2035 = vrot.lane.b32.xlu1 %v2034_v58, %s2293_s13  ;;  %2030 = vrot.lane.b32.xlu0 %v2034_v58, %s2294_s14 }
 0x311   :  { %v986_v63 = vmul.f32 %v969_v14, %v951_v60  ;;  %v1751_v51 = vpack.c.bf16 %v983_v59, %v977_v46  ;;  %v2069_v3 = vpack.i.bf16 %v983_v59, %v977_v46 }
 0x312   :  { %v1749_v5 = vpack.c.bf16 %v984_v61, %v978_v39  ;;  %v1787_v50 = vpack.c.bf16 %v985_v62, %v979_v41  ;;  %v2099_v42 = vpack.i.bf16 %v985_v62, %v984_v61 }
 0x313   :  { %v1785_v38 = vpack.c.bf16 %v986_v63, %v980_v48 }
 0x314   :  { %2045 = vrot.lane.b32.xlu1 %v2034_v58, %s2297_s17  ;;  %2040 = vrot.lane.b32.xlu0 %v2034_v58, %s2295_s15 }
 0x315   :  { %1750 = vmatprep.subr.bf16.mxu0 %v1749_v5  ;;  %1786 = vmatprep.subr.bf16.mxu1 %v1785_v38 }
 0x316   :  { %1752 = vmatpush1.bf16.msra.mxu0 %v1751_v51  ;;  %1788 = vmatpush1.bf16.msra.mxu1 %v1787_v50 }
 0x318   :  { %2055 = vrot.lane.b32.xlu1 %v2034_v58, %s2299_s19  ;;  %2050 = vrot.lane.b32.xlu0 %v2034_v58, %s2296_s16 }
 0x319   :  { %v931_v22 = vpop.f32.mrb[8].mxu1 }
 0x31a   :  { %v932_v0 = vadd.f32 %v931_v22, %v2764_v32  ;;  %v933_v12 = vpop.f32.mrb[9].mxu1 }
 0x31b   :  { %v934_v40 = vadd.f32 %v933_v12, %v2764_v32 }
 0x31c   :  { %v946_v9 = vmax.f32 %v932_v0, 0.0  ;;  %2060 = vrot.lane.b32.xlu0 %v2034_v58, %s2298_s18  ;;  %2070 = vrot.lane.b32.xlu1 %v2069_v3, %s2293_s13 }
 0x31d   :  { %v937_v10 = vpop.f32.mrb[10].mxu1  ;;  %v947_v18 = vmax.f32 %v934_v40, 0.0 }
 0x31e   :  { %v2791_v11 = vmul.f32 %v970_v2, %v946_v9  ;;  %v938_v27 = vadd.f32 %v937_v10, %v2766_v28  ;;  %v939_v16 = vpop.f32.mrb[11].mxu1 }
 0x31f   :  { %v940_v19 = vadd.f32 %v939_v16, %v2766_v28  ;;  %v2800_v25 = vmul.f32 %v965_v37, %v947_v18 }
 0x320   :  { %v952_v21 = vmax.f32 %v938_v27, 0.0  ;;  %2080 = vrot.lane.b32.xlu1 %v2069_v3, %s2297_s17  ;;  %2065 = vrot.lane.b32.xlu0 %v2069_v3, %s2294_s14  ;;  %v2154_v32 = vpack.i.bf16 %v2791_v11, %v980_v48 }
 0x321   :  { %v953_v24 = vmax.f32 %v940_v19, 0.0 }
 0x322   :  { %v2798_v53 = vmul.f32 %v970_v2, %v952_v21 }
 0x323   :  { %v2802_v57 = vmul.f32 %v965_v37, %v953_v24 }
 0x324   :  { %2090 = vrot.lane.b32.xlu1 %v2069_v3, %s2299_s19  ;;  %2075 = vrot.lane.b32.xlu0 %v2069_v3, %s2295_s15  ;;  %v2169_v28 = vpack.i.bf16 %v2798_v53, %v986_v63  ;;  %v1823_v7 = vpack.c.bf16 %v2798_v53, %v2791_v11 }
 0x325   :  { %v2189_v52 = vpack.i.bf16 %v2802_v57, %v2800_v25  ;;  %v1821_v55 = vpack.c.bf16 %v2802_v57, %v2800_v25 }
 0x328   :  { %2100 = vrot.lane.b32.xlu1 %v2099_v42, %s2294_s14  ;;  %2085 = vrot.lane.b32.xlu0 %v2069_v3, %s2296_s16 }
 0x32c   :  { %2105 = vrot.lane.b32.xlu1 %v2034_v58, %s2301_s24  ;;  %2095 = vrot.lane.b32.xlu0 %v2069_v3, %s2298_s18 }
 0x330   :  { %2115 = vrot.lane.b32.xlu1 %v2099_v42, %s2295_s15  ;;  %2110 = vrot.lane.b32.xlu0 %v2099_v42, %s2293_s13 }
 0x334   :  { %2120 = vrot.lane.b32.xlu1 %v2069_v3, %s2301_s24  ;;  %2125 = vrot.lane.b32.xlu0 %v2099_v42, %s2297_s17 }
 0x338   :  { %2130 = vrot.lane.b32.xlu1 %v2099_v42, %s2296_s16  ;;  %2135 = vrot.lane.b32.xlu0 %v2099_v42, %s2299_s19 }
 0x33c   :  { %2140 = vrot.lane.b32.xlu1 %v2099_v42, %s2298_s18  ;;  %2145 = vrot.lane.b32.xlu0 %v2099_v42, %s2301_s24 }
 0x340   :  { %2155 = vrot.lane.b32.xlu1 %v2154_v32, %s2293_s13  ;;  %2150 = vrot.lane.b32.xlu0 %v2154_v32, %s2294_s14 }
 0x344   :  { %2165 = vrot.lane.b32.xlu1 %v2154_v32, %s2297_s17  ;;  %2160 = vrot.lane.b32.xlu0 %v2154_v32, %s2295_s15 }
 0x348   :  { %2170 = vrot.lane.b32.xlu1 %v2169_v28, %s2294_s14  ;;  %2175 = vrot.lane.b32.xlu0 %v2169_v28, %s2293_s13 }
 0x34c   :  { %2180 = vrot.lane.b32.xlu1 %v2169_v28, %s2295_s15  ;;  %2185 = vrot.lane.b32.xlu0 %v2169_v28, %s2297_s17 }
 0x350   :  { %2200 = vrot.lane.b32.xlu1 %v2169_v28, %s2296_s16  ;;  %2190 = vrot.lane.b32.xlu0 %v2189_v52, %s2294_s14 }
 0x354   :  { %2205 = vrot.lane.b32.xlu1 %v2189_v52, %s2293_s13  ;;  %2195 = vrot.lane.b32.xlu0 %v2154_v32, %s2296_s16 }
 0x358   :  { %2210 = vrot.lane.b32.xlu1 %v2154_v32, %s2299_s19  ;;  %2215 = vrot.lane.b32.xlu0 %v2189_v52, %s2295_s15 }
 0x35c   :  { %2225 = vrot.lane.b32.xlu1 %v2189_v52, %s2297_s17  ;;  %2220 = vrot.lane.b32.xlu0 %v2169_v28, %s2299_s19 }
 0x360   :  { %2240 = vrot.lane.b32.xlu1 %v2169_v28, %s2298_s18  ;;  %2230 = vrot.lane.b32.xlu0 %v2189_v52, %s2296_s16 }
 0x364   :  { %2245 = vrot.lane.b32.xlu1 %v2189_v52, %s2299_s19  ;;  %2235 = vrot.lane.b32.xlu0 %v2154_v32, %s2298_s18 }
 0x368   :  { %2250 = vrot.lane.b32.xlu1 %v2154_v32, %s2301_s24  ;;  %2255 = vrot.lane.b32.xlu0 %v2189_v52, %s2298_s18 }
 0x36c   :  { %2265 = vrot.lane.b32.xlu1 %v2189_v52, %s2301_s24  ;;  %2260 = vrot.lane.b32.xlu0 %v2169_v28, %s2301_s24 }
 0x370   :  { %1374 = vperm.xlu0 %1957, %v991_v29  }
 0x382   :  { %v2861_v26 = vpop.permute.xlu1 %2035  ;;  %v2863_v8 = vpop.permute.xlu0 %2030 }
 0x383   :  { %v2033_v13 = vunpack.i.h.bf16 %v2863_v8  ;;  %v2032_v15 = vunpack.i.l.bf16 %v2863_v8  ;;  %v2038_v59 = vunpack.i.h.bf16 %v2861_v26  ;;  %v2037_v60 = vunpack.i.l.bf16 %v2861_v26 }
 0x385   :  { %v1029_v48 = vsel %vm56_vm0, %v2032_v15, %v2033_v13  ;;  %v1075_v12 = vsel %vm80_vm1, %v2037_v60, %v2038_v59 }
 0x386   :  { %v2865_v6 = vpop.permute.xlu1 %2045  ;;  %v2867_v30 = vpop.permute.xlu0 %2040 }
 0x387   :  { %v2043_v62 = vunpack.i.h.bf16 %v2867_v30  ;;  %v2042_v63 = vunpack.i.l.bf16 %v2867_v30  ;;  %v2048_v22 = vunpack.i.h.bf16 %v2865_v6  ;;  %v2047_v0 = vunpack.i.l.bf16 %v2865_v6 }
 0x389   :  { %v1121_v52 = vsel %vm104_vm2, %v2042_v63, %v2043_v62 }
 0x38a   :  { %v2869_v31 = vpop.permute.xlu1 %2055  ;;  %v2871_v33 = vpop.permute.xlu0 %2050 }
 0x38e   :  { %v2873_v34 = vpop.permute.xlu0 %2060  ;;  %v2071_v4 = vpop.permute.xlu1 %2070 }
 0x38f   :  { %v2072_v61 = vunpack.i.l.bf16 %v2071_v4  ;;  %v2073_v51 = vunpack.i.h.bf16 %v2071_v4 }
 0x391   :  { %v1074_v40 = vsel %vm80_vm1, %v2072_v61, %v2037_v60 }
 0x392   :  { %v2875_v14 = vpop.permute.xlu1 %2080  ;;  %v2066_v35 = vpop.permute.xlu0 %2065 }
 0x393   :  { %v2067_v23 = vunpack.i.l.bf16 %v2066_v35  ;;  %v2068_v41 = vunpack.i.h.bf16 %v2066_v35  ;;  %v1167_v35 = vsel %vm128_vm4, %v2047_v0, %v2048_v22 }
 0x395   :  { %v1028_v45 = vsel %vm56_vm0, %v2067_v23, %v2032_v15  ;;  %v2053_v15 = vunpack.i.h.bf16 %v2871_v33  ;;  %v2083_v23 = vunpack.i.h.bf16 %v2875_v14 }
 0x396   :  { %v2877_v1 = vpop.permute.xlu1 %2090  ;;  %v2076_v20 = vpop.permute.xlu0 %2075 }
 0x397   :  { %v2078_v27 = vunpack.i.h.bf16 %v2076_v20  ;;  %v2077_v16 = vunpack.i.l.bf16 %v2076_v20 }
 0x39a   :  { %v2881_v36 = vpop.permute.xlu1 %2100  ;;  %v2883_v39 = vpop.permute.xlu0 %2085 }
 0x39b   :  { %v2103_v43 = vunpack.i.h.bf16 %v2881_v36  ;;  %v2102_v44 = vunpack.i.l.bf16 %v2881_v36 }
 0x39d   :  { %v1033_v46 = vsel %vm56_vm0, %v2068_v41, %v2102_v44  ;;  %v1034_v49 = vsel %vm56_vm0, %v2102_v44, %v2103_v43  ;;  %v2082_v41 = vunpack.i.l.bf16 %v2875_v14  ;;  %v1120_v44 = vsel %vm104_vm2, %v2077_v16, %v2042_v63 }
 0x39e   :  { %v1755_v47 = vpack.c.bf16 %v1033_v46, %v1028_v45  ;;  %v2895_v54 = vpop.permute.xlu1 %2105  ;;  %v2897_v56 = vpop.permute.xlu0 %2095  ;;  %v1753_v58 = vpack.c.bf16 %v1034_v49, %v1029_v48  ;;  %v2052_v48 = vunpack.i.l.bf16 %v2871_v33 }
 0x3a0   :  { %1754 = vmatprep.subr.bf16.mxu0 %v1753_v58  ;;  %v1213_v16 = vsel %vm152_vm3, %v2052_v48, %v2053_v15 }
 0x3a1   :  { %1756 = vmatpush1.bf16.msra.mxu0 %v1755_v47 }
 0x3a2   :  { %v2903_v5 = vpop.permute.xlu1 %2115  ;;  %v2905_v50 = vpop.permute.xlu0 %2110 }
 0x3a3   :  { %v2118_v3 = vunpack.i.h.bf16 %v2903_v5  ;;  %v2117_v38 = vunpack.i.l.bf16 %v2903_v5  ;;  %v2113_v42 = vunpack.i.h.bf16 %v2905_v50  ;;  %v2112_v37 = vunpack.i.l.bf16 %v2905_v50 }
 0x3a5   :  { %v1079_v2 = vsel %vm80_vm1, %v2073_v51, %v2112_v37  ;;  %v1080_v9 = vsel %vm80_vm1, %v2112_v37, %v2113_v42  ;;  %v1126_v10 = vsel %vm104_vm2, %v2117_v38, %v2118_v3  ;;  %v1125_v29 = vsel %vm104_vm2, %v2078_v27, %v2117_v38 }
 0x3a6   :  { %v1759_v18 = vpack.c.bf16 %v1079_v2, %v1074_v40  ;;  %v2924_v19 = vpop.permute.xlu1 %2120  ;;  %v2926_v21 = vpop.permute.xlu0 %2125  ;;  %v1757_v32 = vpack.c.bf16 %v1080_v9, %v1075_v12  ;;  %v1761_v4 = vpack.c.bf16 %v1126_v10, %v1121_v52  ;;  %v1763_v49 = vpack.c.bf16 %v1125_v29, %v1120_v44 }
 0x3a7   :  { %v2128_v24 = vunpack.i.h.bf16 %v2926_v21  ;;  %v2127_v28 = vunpack.i.l.bf16 %v2926_v21  ;;  %v2058_v51 = vunpack.i.h.bf16 %v2869_v31  ;;  %v2057_v37 = vunpack.i.l.bf16 %v2869_v31 }
 0x3a8   :  { %1758 = vmatprep.subr.bf16.mxu0 %v1757_v32  ;;  %v1166_v12 = vsel %vm128_vm4, %v2082_v41, %v2047_v0  ;;  %v2088_v40 = vunpack.i.h.bf16 %v2883_v39  ;;  %v2087_v2 = vunpack.i.l.bf16 %v2883_v39  ;;  %v2093_v52 = vunpack.i.h.bf16 %v2877_v1 }
 0x3a9   :  { %1760 = vmatpush1.bf16.msra.mxu0 %v1759_v18  ;;  %v1172_v20 = vsel %vm128_vm4, %v2127_v28, %v2128_v24  ;;  %v1171_v60 = vsel %vm128_vm4, %v2083_v23, %v2127_v28  ;;  %v2092_v29 = vunpack.i.l.bf16 %v2877_v1  ;;  %v1259_v23 = vsel %vm176_vm6, %v2057_v37, %v2058_v51 }
 0x3aa   :  { %v2944_v45 = vpop.permute.xlu1 %2130  ;;  %v2946_v46 = vpop.permute.xlu0 %2135  ;;  %1762 = vmatprep.subr.bf16.mxu0 %v1761_v4  ;;  %v1765_v61 = vpack.c.bf16 %v1172_v20, %v1167_v35  ;;  %v1767_v27 = vpack.c.bf16 %v1171_v60, %v1166_v12  ;;  %v1212_v4 = vsel %vm152_vm3, %v2087_v2, %v2052_v48  ;;  %v2063_v41 = vunpack.i.h.bf16 %v2873_v34 }
 0x3ab   :  { %v2133_v47 = vunpack.i.h.bf16 %v2944_v45  ;;  %v2132_v58 = vunpack.i.l.bf16 %v2944_v45  ;;  %v2138_v14 = vunpack.i.h.bf16 %v2946_v46  ;;  %v2137_v63 = vunpack.i.l.bf16 %v2946_v46 }
 0x3ac   :  { %v2062_v44 = vunpack.i.l.bf16 %v2873_v34  ;;  %v2107_v1 = vunpack.i.l.bf16 %v2895_v54  ;;  %v2097_v48 = vunpack.i.l.bf16 %v2897_v56 }
 0x3ad   :  { %1764 = vmatpush1.bf16.msra.mxu0 %v1763_v49  ;;  %v1218_v38 = vsel %vm152_vm3, %v2132_v58, %v2133_v47  ;;  %v1217_v18 = vsel %vm152_vm3, %v2088_v40, %v2132_v58  ;;  %v1264_v39 = vsel %vm176_vm6, %v2137_v63, %v2138_v14  ;;  %v2108_v49 = vunpack.i.h.bf16 %v2895_v54 }
 0x3ae   :  { %v2962_v9 = vpop.permute.xlu1 %2140  ;;  %v2964_v10 = vpop.permute.xlu0 %2145  ;;  %1766 = vmatprep.subr.bf16.mxu0 %v1765_v61  ;;  %v1769_v32 = vpack.c.bf16 %v1218_v38, %v1213_v16  ;;  %v1771_v58 = vpack.c.bf16 %v1217_v18, %v1212_v4  ;;  %v1263_v60 = vsel %vm176_vm6, %v2093_v52, %v2137_v63  ;;  %v1773_v61 = vpack.c.bf16 %v1264_v39, %v1259_v23 }
 0x3af   :  { %v2143_v28 = vunpack.i.h.bf16 %v2962_v9  ;;  %v2142_v0 = vunpack.i.l.bf16 %v2962_v9  ;;  %v2098_v38 = vunpack.i.h.bf16 %v2897_v56  ;;  %v2148_v12 = vunpack.i.h.bf16 %v2964_v10 }
 0x3b0   :  { %v2147_v40 = vunpack.i.l.bf16 %v2964_v10  ;;  %v2122_v16 = vunpack.i.l.bf16 %v2924_v19  ;;  %v2123_v56 = vunpack.i.h.bf16 %v2924_v19  ;;  %v1305_v52 = vsel %vm200_vm5, %v2062_v44, %v2063_v41 }
 0x3b1   :  { %1768 = vmatpush1.bf16.msra.mxu0 %v1767_v27  ;;  %v1310_v2 = vsel %vm200_vm5, %v2142_v0, %v2143_v28  ;;  %v1258_v27 = vsel %vm176_vm6, %v2092_v29, %v2057_v37  ;;  %v1309_v39 = vsel %vm200_vm5, %v2098_v38, %v2142_v0  ;;  %v1304_v4 = vsel %vm200_vm5, %v2097_v48, %v2062_v44 }
 0x3b2   :  { %v2978_v35 = vpop.permute.xlu1 %2155  ;;  %v2980_v20 = vpop.permute.xlu0 %2150  ;;  %1770 = vmatprep.subr.bf16.mxu0 %v1769_v32  ;;  %v1775_v63 = vpack.c.bf16 %v1263_v60, %v1258_v27  ;;  %v1777_v29 = vpack.c.bf16 %v1310_v2, %v1305_v52  ;;  %v1355_v23 = vsel %vm224_vm7, %v2123_v56, %v2147_v40  ;;  %v1351_v19 = vsel %vm224_vm7, %v2107_v1, %v2108_v49 }
 0x3b3   :  { %v2152_v37 = vunpack.i.l.bf16 %v2980_v20  ;;  %v1356_v0 = vsel %vm224_vm7, %v2147_v40, %v2148_v12  ;;  %v1350_v60 = vsel %vm224_vm7, %v2122_v16, %v2107_v1  ;;  %v2158_v44 = vunpack.i.h.bf16 %v2978_v35 }
 0x3b4   :  { %v2157_v48 = vunpack.i.l.bf16 %v2978_v35  ;;  %v1783_v52 = vpack.c.bf16 %v1355_v23, %v1350_v60  ;;  %v1781_v40 = vpack.c.bf16 %v1356_v0, %v1351_v19 }
 0x3b5   :  { %1772 = vmatpush1.bf16.msra.mxu0 %v1771_v58  ;;  %v2153_v58 = vunpack.i.h.bf16 %v2980_v20  ;;  %v1030_v1 = vsel %vm56_vm0, %v2033_v13, %v2152_v37 }
 0x3b6   :  { %v2999_v18 = vpop.permute.xlu1 %2165  ;;  %v3001_v32 = vpop.permute.xlu0 %2160  ;;  %1774 = vmatprep.subr.bf16.mxu0 %v1773_v61  ;;  %v1779_v61 = vpack.c.bf16 %v1309_v39, %v1304_v4  ;;  %v1076_v50 = vsel %vm80_vm1, %v2038_v59, %v2157_v48 }
 0x3b7   :  { %v1031_v39 = vsel %vm56_vm0, %v2152_v37, %v2153_v58  ;;  %v2163_v23 = vunpack.i.h.bf16 %v3001_v32  ;;  %v2162_v8 = vunpack.i.l.bf16 %v3001_v32 }
 0x3b9   :  { %1776 = vmatpush1.bf16.msra.mxu0 %v1775_v63  ;;  %v1122_v59 = vsel %vm104_vm2, %v2043_v62, %v2162_v8 }
 0x3ba   :  { %v2171_v38 = vpop.permute.xlu1 %2170  ;;  %v3021_v2 = vpop.permute.xlu0 %2175  ;;  %1778 = vmatprep.subr.bf16.mxu0 %v1777_v29 }
 0x3bb   :  { %v2173_v20 = vunpack.i.h.bf16 %v2171_v38  ;;  %v2172_v27 = vunpack.i.l.bf16 %v2171_v38  ;;  %v2178_v56 = vunpack.i.h.bf16 %v3021_v2  ;;  %v2177_v63 = vunpack.i.l.bf16 %v3021_v2 }
 0x3bc   :  { %v2167_v38 = vunpack.i.l.bf16 %v2999_v18 }
 0x3bd   :  { %v1035_v16 = vsel %vm56_vm0, %v2103_v43, %v2172_v27  ;;  %1780 = vmatpush1.bf16.msra.mxu0 %v1779_v61  ;;  %v1036_v4 = vsel %vm56_vm0, %v2172_v27, %v2173_v20  ;;  %v1082_v29 = vsel %vm80_vm1, %v2177_v63, %v2178_v56  ;;  %v2168_v43 = vunpack.i.h.bf16 %v2999_v18 }
 0x3be   :  { %v1791_v60 = vpack.c.bf16 %v1035_v16, %v1030_v1  ;;  %v3038_v13 = vpop.permute.xlu1 %2180  ;;  %v3040_v19 = vpop.permute.xlu0 %2185  ;;  %1782 = vmatprep.subr.bf16.mxu0 %v1781_v40  ;;  %v1789_v36 = vpack.c.bf16 %v1036_v4, %v1031_v39  ;;  %v1077_v61 = vsel %vm80_vm1, %v2157_v48, %v2158_v44  ;;  %v1081_v27 = vsel %vm80_vm1, %v2113_v42, %v2177_v63  ;;  %v3057_v39 = vld [vmem:[%s3197_s6] sm:$0xff] }
 0x3bf   :  { %v2183_v37 = vunpack.i.h.bf16 %v3038_v13  ;;  %v2182_v0 = vunpack.i.l.bf16 %v3038_v13  ;;  %v2187_v1 = vunpack.i.l.bf16 %v3040_v19  ;;  %v1793_v40 = vpack.c.bf16 %v1082_v29, %v1077_v61 }
 0x3c0   :  { %1790 = vmatprep.subr.bf16.mxu1 %v1789_v36  ;;  %v2188_v16 = vunpack.i.h.bf16 %v3040_v19  ;;  %v1795_v29 = vpack.c.bf16 %v1081_v27, %v1076_v50  ;;  %v1168_v11 = vsel %vm128_vm4, %v2048_v22, %v2167_v38 }
 0x3c1   :  { %1784 = vmatpush1.bf16.msra.mxu0 %v1783_v52  ;;  %1792 = vmatpush1.bf16.msra.mxu1 %v1791_v60  ;;  %v1128_v4 = vsel %vm104_vm2, %v2182_v0, %v2183_v37  ;;  %v1123_v52 = vsel %vm104_vm2, %v2162_v8, %v2163_v23  ;;  %v1127_v60 = vsel %vm104_vm2, %v2118_v3, %v2182_v0 }
 0x3c2   :  { %v3065_v42 = vpop.permute.xlu1 %2200  ;;  %v2191_v63 = vpop.permute.xlu0 %2190  ;;  %1794 = vmatprep.subr.bf16.mxu1 %v1793_v40  ;;  %1822 = vmatprep.subr.bf16.mxu0 %v1821_v55  ;;  %v1173_v25 = vsel %vm128_vm4, %v2128_v24, %v2187_v1  ;;  %v1797_v57 = vpack.c.bf16 %v1128_v4, %v1123_v52  ;;  %v1169_v55 = vsel %vm128_vm4, %v2167_v38, %v2168_v43 }
 0x3c3   :  { %v2193_v26 = vunpack.i.h.bf16 %v2191_v63  ;;  %v2192_v36 = vunpack.i.l.bf16 %v2191_v63  ;;  %v1174_v30 = vsel %vm128_vm4, %v2187_v1, %v2188_v16  ;;  %v1799_v62 = vpack.c.bf16 %v1127_v60, %v1122_v59 }
 0x3c4   :  { %1446 = vmatmul.mubr.f32.vlgmr.msra.gmra.mrb[6].mxu0 %v3057_v39  ;;  %v2203_v21 = vunpack.i.h.bf16 %v3065_v42  ;;  %v2202_v24 = vunpack.i.l.bf16 %v3065_v42  ;;  %v1801_v40 = vpack.c.bf16 %v1174_v30, %v1169_v55  ;;  %v1803_v50 = vpack.c.bf16 %v1173_v25, %v1168_v11 }
 0x3c5   :  { %v1037_v5 = vsel %vm56_vm0, %v2173_v20, %v2193_v26  ;;  %v1032_v3 = vsel %vm56_vm0, %v2153_v58, %v2192_v36  ;;  %v1825_v48 = vpack.c.bf16 %v2193_v26, %v2192_v36  ;;  %1796 = vmatpush1.bf16.msra.mxu1 %v1795_v29  ;;  %1824 = vmatpush1.bf16.msra.mxu0 %v1823_v7 }
 0x3c6   :  { %v1827_v8 = vpack.c.bf16 %v1037_v5, %v1032_v3  ;;  %v2206_v0 = vpop.permute.xlu1 %2205  ;;  %v3096_v20 = vpop.permute.xlu0 %2195  ;;  %1798 = vmatprep.subr.bf16.mxu1 %v1797_v57  ;;  %1652 = vmatprep.mubr.msk.f32.mxu0 %vm1377_vm9, %v2832_v17  ;;  %v1220_v2 = vsel %vm152_vm3, %v2202_v24, %v2203_v21  ;;  %v1219_v38 = vsel %vm152_vm3, %v2133_v47, %v2202_v24 }
 0x3c7   :  { %v2208_v58 = vunpack.i.h.bf16 %v2206_v0  ;;  %v2207_v61 = vunpack.i.l.bf16 %v2206_v0  ;;  %v2198_v27 = vunpack.i.h.bf16 %v3096_v20  ;;  %v2197_v1 = vunpack.i.l.bf16 %v3096_v20  ;;  %1826 = vmatprep.subr.bf16.mxu0 %v1825_v48 }
 0x3c9   :  { %v1078_v53 = vsel %vm80_vm1, %v2158_v44, %v2207_v61  ;;  %v1083_v7 = vsel %vm80_vm1, %v2178_v56, %v2208_v58  ;;  %v1829_v4 = vpack.c.bf16 %v2208_v58, %v2207_v61  ;;  %1800 = vmatpush1.bf16.msra.mxu1 %v1799_v62  ;;  %1828 = vmatpush1.bf16.msra.mxu0 %v1827_v8 }
 0x3ca   :  { %v1831_v63 = vpack.c.bf16 %v1083_v7, %v1078_v53  ;;  %v3111_v52 = vpop.permute.xlu1 %2210  ;;  %v2216_v17 = vpop.permute.xlu0 %2215  ;;  %1802 = vmatprep.subr.bf16.mxu1 %v1801_v40  ;;  %v1215_v6 = vsel %vm152_vm3, %v2197_v1, %v2198_v27  ;;  %v1214_v22 = vsel %vm152_vm3, %v2053_v15, %v2197_v1 }
 0x3cb   :  { %v2218_v35 = vunpack.i.h.bf16 %v2216_v17  ;;  %v2217_v44 = vunpack.i.l.bf16 %v2216_v17  ;;  %1830 = vmatprep.subr.bf16.mxu0 %v1829_v4  ;;  %v1805_v56 = vpack.c.bf16 %v1220_v2, %v1215_v6  ;;  %v1807_v60 = vpack.c.bf16 %v1219_v38, %v1214_v22 }
 0x3cc   :  { %v2213_v26 = vunpack.i.h.bf16 %v3111_v52  ;;  %v2212_v36 = vunpack.i.l.bf16 %v3111_v52 }
 0x3cd   :  { %v1129_v29 = vsel %vm104_vm2, %v2183_v37, %v2218_v35  ;;  %v1124_v33 = vsel %vm104_vm2, %v2163_v23, %v2217_v44  ;;  %v1833_v15 = vpack.c.bf16 %v2218_v35, %v2217_v44  ;;  %1804 = vmatpush1.bf16.msra.mxu1 %v1803_v50  ;;  %1832 = vmatpush1.bf16.msra.mxu0 %v1831_v63 }
 0x3ce   :  { %v1835_v59 = vpack.c.bf16 %v1129_v29, %v1124_v33  ;;  %v2226_v45 = vpop.permute.xlu1 %2225  ;;  %v2221_v25 = vpop.permute.xlu0 %2220  ;;  %1806 = vmatprep.subr.bf16.mxu1 %v1805_v56  ;;  %v1260_v3 = vsel %vm176_vm6, %v2058_v51, %v2212_v36 }
 0x3cf   :  { %v2228_v47 = vunpack.i.h.bf16 %v2226_v45  ;;  %v2227_v13 = vunpack.i.l.bf16 %v2226_v45  ;;  %v2223_v57 = vunpack.i.h.bf16 %v2221_v25  ;;  %v2222_v37 = vunpack.i.l.bf16 %v2221_v25  ;;  %1834 = vmatprep.subr.bf16.mxu0 %v1833_v15 }
 0x3d1   :  { %v1170_v32 = vsel %vm128_vm4, %v2168_v43, %v2227_v13  ;;  %v1175_v23 = vsel %vm128_vm4, %v2188_v16, %v2228_v47  ;;  %v1837_v55 = vpack.c.bf16 %v2228_v47, %v2227_v13  ;;  %v1265_v5 = vsel %vm176_vm6, %v2138_v14, %v2222_v37  ;;  %1808 = vmatpush1.bf16.msra.mxu1 %v1807_v60 }
 0x3d2   :  { %v1839_v48 = vpack.c.bf16 %v1175_v23, %v1170_v32  ;;  %1836 = vmatpush1.bf16.msra.mxu0 %v1835_v59  ;;  %v2241_v30 = vpop.permute.xlu1 %2240  ;;  %v2231_v18 = vpop.permute.xlu0 %2230  ;;  %v1266_v43 = vsel %vm176_vm6, %v2222_v37, %v2223_v57  ;;  %v1811_v62 = vpack.c.bf16 %v1265_v5, %v1260_v3  ;;  %v1261_v16 = vsel %vm176_vm6, %v2212_v36, %v2213_v26 }
 0x3d3   :  { %v2233_v19 = vunpack.i.h.bf16 %v2231_v18  ;;  %v2232_v24 = vunpack.i.l.bf16 %v2231_v18  ;;  %1838 = vmatprep.subr.bf16.mxu0 %v1837_v55  ;;  %v1809_v46 = vpack.c.bf16 %v1266_v43, %v1261_v16  ;;  %v2243_v8 = vunpack.i.h.bf16 %v2241_v30 }
 0x3d4   :  { %v2242_v0 = vunpack.i.l.bf16 %v2241_v30 }
 0x3d5   :  { %v1221_v14 = vsel %vm152_vm3, %v2203_v21, %v2233_v19  ;;  %v1216_v31 = vsel %vm152_vm3, %v2198_v27, %v2232_v24  ;;  %v1841_v51 = vpack.c.bf16 %v2233_v19, %v2232_v24  ;;  %1810 = vmatprep.subr.bf16.mxu1 %v1809_v46 }
 0x3d6   :  { %v1843_v20 = vpack.c.bf16 %v1221_v14, %v1216_v31  ;;  %1840 = vmatpush1.bf16.msra.mxu0 %v1839_v48  ;;  %v2246_v58 = vpop.permute.xlu1 %2245  ;;  %v2236_v61 = vpop.permute.xlu0 %2235  ;;  %1812 = vmatpush1.bf16.msra.mxu1 %v1811_v62  ;;  %v1311_v4 = vsel %vm200_vm5, %v2143_v28, %v2242_v0  ;;  %v1312_v44 = vsel %vm200_vm5, %v2242_v0, %v2243_v8 }
 0x3d7   :  { %v2248_v1 = vunpack.i.h.bf16 %v2246_v58  ;;  %v2247_v40 = vunpack.i.l.bf16 %v2246_v58  ;;  %v2238_v11 = vunpack.i.h.bf16 %v2236_v61  ;;  %v2237_v53 = vunpack.i.l.bf16 %v2236_v61  ;;  %1842 = vmatprep.subr.bf16.mxu0 %v1841_v51 }
 0x3d9   :  { %v1262_v42 = vsel %vm176_vm6, %v2213_v26, %v2247_v40  ;;  %v1267_v21 = vsel %vm176_vm6, %v2223_v57, %v2248_v1  ;;  %v1845_v7 = vpack.c.bf16 %v2248_v1, %v2247_v40  ;;  %v1306_v27 = vsel %vm200_vm5, %v2063_v41, %v2237_v53 }
 0x3da   :  { %v1847_v50 = vpack.c.bf16 %v1267_v21, %v1262_v42  ;;  %1844 = vmatpush1.bf16.msra.mxu0 %v1843_v20  ;;  %v2251_v63 = vpop.permute.xlu1 %2250  ;;  %v2256_v52 = vpop.permute.xlu0 %2255  ;;  %v1307_v17 = vsel %vm200_vm5, %v2237_v53, %v2238_v11  ;;  %v1815_v6 = vpack.c.bf16 %v1311_v4, %v1306_v27 }
 0x3db   :  { %v2258_v22 = vunpack.i.h.bf16 %v2256_v52  ;;  %v2257_v35 = vunpack.i.l.bf16 %v2256_v52  ;;  %1846 = vmatprep.subr.bf16.mxu0 %v1845_v7  ;;  %v2252_v2 = vunpack.i.l.bf16 %v2251_v63  ;;  %v1813_v34 = vpack.c.bf16 %v1312_v44, %v1307_v17 }
 0x3dc   :  { %v2253_v28 = vunpack.i.h.bf16 %v2251_v63 }
 0x3dd   :  { %v1313_v41 = vsel %vm200_vm5, %v2243_v8, %v2258_v22  ;;  %v1308_v9 = vsel %vm200_vm5, %v2238_v11, %v2257_v35  ;;  %v1849_v56 = vpack.c.bf16 %v2258_v22, %v2257_v35  ;;  %1814 = vmatprep.subr.bf16.mxu1 %v1813_v34  ;;  %v1352_v59 = vsel %vm224_vm7, %v2108_v49, %v2252_v2 }
 0x3de   :  { %v1851_v38 = vpack.c.bf16 %v1313_v41, %v1308_v9  ;;  %1848 = vmatpush1.bf16.msra.mxu0 %v1847_v50  ;;  %v2266_v29 = vpop.permute.xlu1 %2265  ;;  %v2261_v33 = vpop.permute.xlu0 %2260  ;;  %1816 = vmatpush1.bf16.msra.mxu1 %v1815_v6  ;;  %v1353_v32 = vsel %vm224_vm7, %v2252_v2, %v2253_v28 }
 0x3df   :  { %v2268_v15 = vunpack.i.h.bf16 %v2266_v29  ;;  %v2267_v60 = vunpack.i.l.bf16 %v2266_v29  ;;  %v2263_v26 = vunpack.i.h.bf16 %v2261_v33  ;;  %v2262_v36 = vunpack.i.l.bf16 %v2261_v33  ;;  %1850 = vmatprep.subr.bf16.mxu0 %v1849_v56 }
 0x3e1   :  { %v1354_v45 = vsel %vm224_vm7, %v2253_v28, %v2267_v60  ;;  %v1853_v25 = vpack.c.bf16 %v2268_v15, %v2267_v60  ;;  %v1359_v47 = vsel %vm224_vm7, %v2263_v26, %v2268_v15  ;;  %v1357_v13 = vsel %vm224_vm7, %v2148_v12, %v2262_v36 }
 0x3e2   :  { %v1855_v57 = vpack.c.bf16 %v1359_v47, %v1354_v45  ;;  %v1819_v37 = vpack.c.bf16 %v1357_v13, %v1352_v59  ;;  %1852 = vmatpush1.bf16.msra.mxu0 %v1851_v38  ;;  %v1358_v23 = vsel %vm224_vm7, %v2262_v36, %v2263_v26 }
 0x3e3   :  { %1854 = vmatprep.subr.bf16.mxu0 %v1853_v25  ;;  %v1817_v54 = vpack.c.bf16 %v1358_v23, %v1353_v32 }
 0x3e5   :  { %1818 = vmatprep.subr.bf16.mxu1 %v1817_v54 }
 0x3e6   :  { %1820 = vmatpush1.bf16.msra.mxu1 %v1819_v37  ;;  %1856 = vmatpush1.bf16.msra.mxu0 %v1855_v57 }
 0x3e9   :  { %1517 = vmatmul.mubr.f32.vlgmr.msra.gmra.mrb[12].mxu1 %v3057_v39  ;;  %1588 = vmatmul.mubr.f32.vlgmr.msra.gmra.mrb[8].mxu0 %v3057_v39 }
 0x3ef   :  { %v1375_v49 = vpop.permute.xlu0 %1374 }
 0x497   :  { %v1447_v10 = vpop.f32.mrb[6].mxu0 }
 0x498   :  { %v1448_v55 = vadd.f32 %v1447_v10, %v1375_v49  ;;  %v1449_v12 = vpop.f32.mrb[7].mxu0 }
 0x499   :  { %v1450_v5 = vadd.f32 %v1449_v12, %v1375_v49 }
 0x49a   :  { %v1594_v3 = vsub.f32 0.0, %v1448_v55 }
 0x49b   :  { %v1595_v48 = vsub.f32 0.0, %v1450_v5 }
 0x49c   :  { %v1600_v30 = vmul.f32 1.442695, %v1594_v3 }
 0x49d   :  { %v1602_v18 = vmul.f32 1.442695, %v1595_v48 }
 0x49e   :  { %2269 = vpow2.f32 %v1600_v30 }
 0x49f   :  { %2271 = vpow2.f32 %v1602_v18 }
 0x4a8   :  { %v2270_v43 = vpop.eup %2269 }
 0x4a9   :  { %v2272_v62 = vpop.eup %2271  ;;  %v1612_v19 = vadd.f32 1.0, %v2270_v43 }
 0x4aa   :  { %v1613_v24 = vadd.f32 1.0, %v2272_v62 }
 0x4ab   :  { %2273 = vrcp.f32 %v1612_v19 }
 0x4ac   :  { %2275 = vrcp.f32 %v1613_v24 }
 0x4b5   :  { %v2274_v16 = vpop.eup %2273 }
 0x4b6   :  { %v2276_v46 = vpop.eup %2275  ;;  %1630 = vst [vmem:[%s3199_s8] sm:$0xff] %v2274_v16 }
 0x4b7   :  { %1631 = vst [vmem:[%s3199_s8 + $0x8] sm:$0xff] %v2276_v46 }
 0x4bc   :  { %v1518_v39 = vpop.f32.mrb[12].mxu1  ;;  %v1589_v14 = vpop.f32.mrb[8].mxu0 }
 0x4bd   :  { %v1519_v31 = vadd.f32 %v1518_v39, %v1375_v49  ;;  %v1590_v51 = vadd.f32 %v1589_v14, %v1375_v49  ;;  %v1520_v8 = vpop.f32.mrb[13].mxu1  ;;  %v1591_v0 = vpop.f32.mrb[9].mxu0 }
 0x4be   :  { %v1521_v20 = vadd.f32 %v1520_v8, %v1375_v49  ;;  %v1592_v58 = vadd.f32 %v1591_v0, %v1375_v49 }
 0x4bf   :  { %v1596_v61 = vsub.f32 0.0, %v1519_v31  ;;  %v1598_v1 = vsub.f32 0.0, %v1590_v51 }
 0x4c0   :  { %v1597_v40 = vsub.f32 0.0, %v1521_v20  ;;  %v1599_v11 = vsub.f32 0.0, %v1592_v58 }
 0x4c1   :  { %v1604_v53 = vmul.f32 1.442695, %v1596_v61  ;;  %v1608_v42 = vmul.f32 1.442695, %v1598_v1 }
 0x4c2   :  { %v1606_v21 = vmul.f32 1.442695, %v1597_v40  ;;  %v1610_v7 = vmul.f32 1.442695, %v1599_v11 }
 0x4c3   :  { %2277 = vpow2.f32 %v1604_v53 }
 0x4c4   :  { %2279 = vpow2.f32 %v1608_v42 }
 0x4c5   :  { %2281 = vpow2.f32 %v1606_v21 }
 0x4c6   :  { %2283 = vpow2.f32 %v1610_v7 }
 0x4cd   :  { %v2278_v27 = vpop.eup %2277 }
 0x4ce   :  { %v2280_v4 = vpop.eup %2279  ;;  %v1614_v50 = vadd.f32 1.0, %v2278_v27 }
 0x4cf   :  { %v2282_v63 = vpop.eup %2281  ;;  %v1616_v52 = vadd.f32 1.0, %v2280_v4 }
 0x4d0   :  { %v2284_v17 = vpop.eup %2283  ;;  %2285 = vrcp.f32 %v1614_v50  ;;  %v1615_v6 = vadd.f32 1.0, %v2282_v63 }
 0x4d1   :  { %2287 = vrcp.f32 %v1616_v52  ;;  %v1617_v22 = vadd.f32 1.0, %v2284_v17 }
 0x4d2   :  { %2289 = vrcp.f32 %v1615_v6 }
 0x4d3   :  { %2291 = vrcp.f32 %v1617_v22 }
 0x4da   :  { %v2286_v35 = vpop.eup %2285 }
 0x4db   :  { %v2288_v44 = vpop.eup %2287  ;;  %1632 = vst [vmem:[%s3199_s8 + $0x10] sm:$0xff] %v2286_v35 }
 0x4dc   :  { %v2290_v2 = vpop.eup %2289  ;;  %1634 = vst [vmem:[%s3199_s8 + $0x20] sm:$0xff] %v2288_v44 }
 0x4dd   :  { %v2292_v34 = vpop.eup %2291  ;;  %1633 = vst [vmem:[%s3199_s8 + $0x18] sm:$0xff] %v2290_v2 }
 0x4de   :  { %1636 = vst.msk [vmem:[%s3199_s8 + $0x28] sm:$0xff] %vm1635_vm10, %v2292_v34 }

</bundles_post_ra>
